<compile_context>
chip_gen: v5e
topology: v5e:2x2
jax: 0.10.0
libtpu: 0.0.40
codegen_flags: <defaults>
</compile_context>

<pallas_src>
from functools import partial

import jax
import jax.numpy as jnp
from jax.experimental import pallas as pl
from jax.experimental.pallas import tpu as pltpu


# ----------------------------------------------------------------------------
# Single fused Pallas kernel: conv stack + pool + MLP head, all VMEM-resident,
# operating on one batch tile (B_tile samples, R = B_tile*16 stacked rows).
# ----------------------------------------------------------------------------
def actor_fused_kernel(x_ref, state_ref, sel_ref,
                       m1_ref, t1_ref,
                       m2_ref, s2_ref, t2_ref,
                       m3_ref, s3_ref, t3_ref,
                       q4_ref,
                       w1a_ref, w1b_ref, b1_ref,
                       w2_ref, b2_ref, w3_ref, b3_ref,
                       o_ref, *, max_action):
    R = x_ref.shape[0]                           # B_tile * 16 stacked image rows

    def mm(a, b):
        return jnp.dot(a, b, preferred_element_type=jnp.float32)

    x = x_ref[...]                               # (R, 16)

    # ---- conv1 -> BN1 (BN1 scale folded into m1, shift = t1) ---------------
    # Three tap matmuls over ALL rows of the tile; row shifts via static
    # sublane slices.  Rows that straddle sample boundaries become garbage
    # rows that are never read downstream.
    z0, z1, z2 = mm(x, m1_ref[0]), mm(x, m1_ref[1]), mm(x, m1_ref[2])
    y1 = z0[0:R - 2] + z1[1:R - 1] + z2[2:R] + t1_ref[...]          # (R-2, 128)
    # TODO(synk): Dropout2d(0.1) is identity in eval/inference mode; no RNG path.

    # ---- conv2 -> ReLU -> BN2 ----------------------------------------------
    z0, z1, z2 = mm(y1, m2_ref[0]), mm(y1, m2_ref[1]), mm(y1, m2_ref[2])
    y2 = z0[0:R - 4] + z1[1:R - 3] + z2[2:R - 2]                    # (R-4, 128)
    y2 = jnp.maximum(y2, 0.0) * s2_ref[...] + t2_ref[...]

    # ---- conv3 (stride 2) -> ReLU -> BN3 -----------------------------------
    # Tap matmuls computed at every row offset; only the even offsets are real
    # stride-2 outputs — the odd rows are dropped by the q4/sel stage below.
    z0, z1, z2 = mm(y2, m3_ref[0]), mm(y2, m3_ref[1]), mm(y2, m3_ref[2])
    y3 = z0[0:R - 6] + z1[1:R - 5] + z2[2:R - 4]                    # (R-6, 128)
    y3 = jnp.maximum(y3, 0.0) * s3_ref[...] + t3_ref[...]

    # ---- conv4 + AdaptiveAvgPool (folded into q4) --------------------------
    # feat[n] = sum_r y3[n*16 + 2r] @ q4[r]; the stride-2 selection becomes
    # shifted adds and the per-sample gather is a single one-hot matmul.
    tq = [mm(y3, q4_ref[r]) for r in range(5)]                      # (R-6, 128)
    u = (tq[0][0:R - 14] + tq[1][2:R - 12] + tq[2][4:R - 10]
         + tq[3][6:R - 8] + tq[4][8:R - 6])                         # (R-14, 128)
    feat = mm(sel_ref[...], u)                   # (B_tile, 128); lanes 16.. are 0

    # ---- MLP head on the whole batch tile ----------------------------------
    # torch.cat([feat, state]) expressed as a split matmul.
    h = jnp.maximum(mm(feat, w1a_ref[...]) + mm(state_ref[...], w1b_ref[...])
                    + b1_ref[...], 0.0)
    h = jnp.maximum(mm(h, w2_ref[...]) + b2_ref[...], 0.0)
    o_ref[...] = max_action * jnp.tanh(mm(h, w3_ref[...]) + b3_ref[...])


# ----------------------------------------------------------------------------
# One-time weight preparation (hoisted out of the hot path): BN folding,
# structured fused-lane conv matrices, lane-padding to 128, MLP transposes.
# ----------------------------------------------------------------------------
def prepare_actor(params, img_hw=16):
    f32 = jnp.float32
    LANE = 128

    def bn_fold(gamma, beta, mean, var, eps=1e-5):
        scale = gamma / jnp.sqrt(var + eps)
        return scale, beta - mean * scale

    def conv_row_mats(w_oihw, w_in, stride):
        # M[di][w*Ci + c, j*Co + o] = w[o, c, di, w - stride*j]
        Co, Ci, kh, kw = w_oihw.shape
        wo = (w_in - kw) // stride + 1
        w_idx = jnp.arange(w_in)[:, None, None]
        j_idx = jnp.arange(wo)[None, :, None]
        d_idx = jnp.arange(kw)[None, None, :]
        sel = (w_idx == stride * j_idx + d_idx).astype(f32)           # (w_in, wo, kw)
        m = jnp.einsum("wjd,ocid->iwcjo", sel, w_oihw.astype(f32))
        return m.reshape(kh, w_in * Ci, wo * Co), wo

    def conv_pool_mats(w_oihw, h_in, w_in):
        # conv4 + AdaptiveAvgPool2d((1,1)) is linear: fold into per-input-row
        # matrices Q[r] so that  feat = sum_r A[r, :] @ Q[r]   (exact).
        Co, Ci, kh, kw = w_oihw.shape
        ho, wo = h_in - kh + 1, w_in - kw + 1
        r_idx, di_idx = jnp.arange(h_in)[:, None], jnp.arange(kh)[None, :]
        w_idx, dj_idx = jnp.arange(w_in)[:, None], jnp.arange(kw)[None, :]
        sel_h = ((r_idx - di_idx >= 0) & (r_idx - di_idx < ho)).astype(f32)
        sel_w = ((w_idx - dj_idx >= 0) & (w_idx - dj_idx < wo)).astype(f32)
        q = jnp.einsum("ri,wj,ocij->rwco", sel_h, sel_w,
                       w_oihw.astype(f32)) / float(ho * wo)
        return q.reshape(h_in, w_in * Ci, Co)

    def pad_stack(m, rows, cols):
        kh, ci, co = m.shape
        return jnp.zeros((kh, rows, cols), f32).at[:, :ci, :co].set(m)

    def row_pad(v, reps, cols=LANE):
        r = jnp.tile(v.astype(f32), reps)
        return jnp.pad(r, (0, cols - r.shape[0])).reshape(1, cols)

    s1, t1 = bn_fold(*params["bn1"])
    s2, t2 = bn_fold(*params["bn2"])
    s3, t3 = bn_fold(*params["bn3"])

    m1, wo1 = conv_row_mats(params["w_conv1"], img_hw, 1)        # (3, 16, 112)
    m2, wo2 = conv_row_mats(params["w_conv2"], img_hw - 2, 1)    # (3, 112, 120)
    m3, wo3 = conv_row_mats(params["w_conv3"], img_hw - 4, 2)    # (3, 120, 60)
    hw4 = (img_hw - 4 - 3) // 2 + 1                              # 5
    q4 = conv_pool_mats(params["w_conv4"], hw4, hw4)             # (5, 60, 16)

    # conv1 -> BN1 has no ReLU in between: fold BN1's scale into the matrices.
    m1 = m1 * jnp.tile(s1, wo1)[None, None, :]

    # Lane-pad everything to 128 (zero pad lanes stay exactly zero end-to-end).
    m1p = pad_stack(m1, m1.shape[1], LANE)                       # (3, 16, 128)
    m2p = pad_stack(m2, LANE, LANE)                              # (3, 128, 128)
    m3p = pad_stack(m3, LANE, LANE)                              # (3, 128, 128)
    q4p = pad_stack(q4, LANE, LANE)                              # (5, 128, 128)

    w1 = params["w1"].astype(f32)
    w1a = jnp.zeros((LANE, w1.shape[0]), f32).at[:16, :].set(w1[:, :16].T)
    w1b = w1[:, 16:].T
    a_dim = params["w3"].shape[0]
    a_pad = ((a_dim + LANE - 1) // LANE) * LANE
    w2 = params["w2"].T.astype(f32)
    w3 = jnp.zeros((w2.shape[1], a_pad), f32).at[:, :a_dim].set(
        params["w3"].T.astype(f32))
    b3 = jnp.zeros((1, a_pad), f32).at[:, :a_dim].set(
        params["b3"].reshape(1, -1).astype(f32))

    return {
        "m1": m1p, "t1": row_pad(t1, wo1),
        "m2": m2p, "s2": row_pad(s2, wo2), "t2": row_pad(t2, wo2),
        "m3": m3p, "s3": row_pad(s3, wo3), "t3": row_pad(t3, wo3),
        "q4": q4p,
        "w1a": w1a, "w1b": w1b, "b1": params["b1"].reshape(1, -1).astype(f32),
        "w2": w2, "b2": params["b2"].reshape(1, -1).astype(f32),
        "w3": w3, "b3": b3,
    }


# ----------------------------------------------------------------------------
# Wrapper: batch-tiled grid, weights replicated, one pallas_call.
# ----------------------------------------------------------------------------
def _rep_spec(shape):
    zeros = (0,) * len(shape)
    return pl.BlockSpec(shape, lambda i, _z=zeros: _z)


def _choose_tile(n):
    if n <= 8:
        return n, n
    for cand in (64, 32, 16, 8):
        if n % cand == 0:
            return cand, n
    return 8, ((n + 7) // 8) * 8


@partial(jax.jit, static_argnames=("max_action", "action_dim"))
def actor_forward(prep, x_nchw, state, max_action, action_dim):
    n = x_nchw.shape[0]
    img_h, img_w = x_nchw.shape[2], x_nchw.shape[3]
    a_pad = prep["w3"].shape[1]

    # NCHW (C==1) -> per-batch stacked 2-D rows: (N*H, W).  Pure input prep.
    x2d = x_nchw.astype(jnp.float32).reshape(n * img_h, img_w)
    state = state.astype(jnp.float32)
    sd_in = state.shape[1]

    b_tile, n_pad = _choose_tile(n)
    if n_pad != n:
        x2d = jnp.pad(x2d, ((0, (n_pad - n) * img_h), (0, 0)))
        state = jnp.pad(state, ((0, n_pad - n), (0, 0)))

    r_tile = b_tile * img_h
    u_rows = r_tile - 14
    # One-hot gather matrix: feat rows live at stacked index n*16 of `u`.
    sel = (jnp.arange(b_tile)[:, None] * img_h
           == jnp.arange(u_rows)[None, :]).astype(jnp.float32)

    weight_order = ("m1", "t1", "m2", "s2", "t2", "m3", "s3", "t3", "q4",
                    "w1a", "w1b", "b1", "w2", "b2", "w3", "b3")
    weights = [prep[k] for k in weight_order]

    in_specs = ([pl.BlockSpec((r_tile, img_w), lambda i: (i, 0)),
                 pl.BlockSpec((b_tile, sd_in), lambda i: (i, 0)),
                 _rep_spec(sel.shape)]
                + [_rep_spec(a.shape) for a in weights])
    out_spec = pl.BlockSpec((b_tile, a_pad), lambda i: (i, 0))

    kernel = partial(actor_fused_kernel, max_action=float(max_action))
    out = pl.pallas_call(
        kernel,
        out_shape=jax.ShapeDtypeStruct((n_pad, a_pad), jnp.float32),
        grid=(n_pad // b_tile,),
        in_specs=in_specs,
        out_specs=out_spec,
        compiler_params=pltpu.CompilerParams(
            dimension_semantics=("parallel",),      # megacore sharding on v7x
            vmem_limit_bytes=32 * 1024 * 1024),
    )(x2d, state, sel, *weights)
    return out[:n, :action_dim]


# ----------------------------------------------------------------------------
# Pure-JAX reference (numerical self-check).
# ----------------------------------------------------------------------------
def reference_forward(params, x_nchw, state, max_action):
    prec = jax.lax.Precision.HIGHEST

    def conv(x, w, stride):
        return jax.lax.conv_general_dilated(
            x, w, window_strides=(stride, stride), padding="VALID",
            dimension_numbers=("NCHW", "OIHW", "NCHW"), precision=prec)

    def bn(x, gamma, beta, mean, var, eps=1e-5):
        scale = gamma / jnp.sqrt(var + eps)
        shift = beta - mean * scale
        return x * scale[None, :, None, None] + shift[None, :, None, None]

    x = bn(conv(x_nchw, params["w_conv1"], 1), *params["bn1"])
    x = bn(jax.nn.relu(conv(x, params["w_conv2"], 1)), *params["bn2"])
    x = bn(jax.nn.relu(conv(x, params["w_conv3"], 2)), *params["bn3"])
    x = conv(x, params["w_conv4"], 1)
    feat = jnp.mean(x, axis=(2, 3))                 # AdaptiveAvgPool2d((1,1)) + view
    h = jnp.concatenate([feat, state], axis=1)
    h = jax.nn.relu(jnp.dot(h, params["w1"].T, precision=prec) + params["b1"])
    h = jax.nn.relu(jnp.dot(h, params["w2"].T, precision=prec) + params["b2"])
    return max_action * jnp.tanh(jnp.dot(h, params["w3"].T, precision=prec) + params["b3"])


# ----------------------------------------------------------------------------
# Parameter construction (deterministic, synthetic, PyTorch layouts).
# ----------------------------------------------------------------------------
def init_params(key, state_dim, action_dim):
    ks = jax.random.split(key, 20)
    p = {}
    p["w_conv1"] = jax.random.normal(ks[0], (8, 1, 3, 3), jnp.float32) * 0.2
    p["w_conv2"] = jax.random.normal(ks[1], (10, 8, 3, 3), jnp.float32) * 0.1
    p["w_conv3"] = jax.random.normal(ks[2], (12, 10, 3, 3), jnp.float32) * 0.1
    p["w_conv4"] = jax.random.normal(ks[3], (16, 12, 3, 3), jnp.float32) * 0.1

    def bn(k, c):
        k1, k2, k3, k4 = jax.random.split(k, 4)
        gamma = 0.5 + jax.random.uniform(k1, (c,), jnp.float32)
        beta = jax.random.normal(k2, (c,), jnp.float32) * 0.1
        mean = jax.random.normal(k3, (c,), jnp.float32) * 0.1
        var = 0.5 + jax.random.uniform(k4, (c,), jnp.float32)
        return gamma, beta, mean, var

    p["bn1"] = bn(ks[4], 8)
    p["bn2"] = bn(ks[5], 10)
    p["bn3"] = bn(ks[6], 12)

    in1 = state_dim + 15
    p["w1"] = jax.random.normal(ks[7], (512, in1), jnp.float32) * (1.0 / jnp.sqrt(in1))
    p["b1"] = jax.random.normal(ks[8], (512,), jnp.float32) * 0.05
    p["w2"] = jax.random.normal(ks[9], (256, 512), jnp.float32) * (1.0 / jnp.sqrt(512))
    p["b2"] = jax.random.normal(ks[10], (256,), jnp.float32) * 0.05
    p["w3"] = jax.random.normal(ks[11], (action_dim, 256), jnp.float32) * (1.0 / jnp.sqrt(256))
    p["b3"] = jax.random.normal(ks[12], (action_dim,), jnp.float32) * 0.05
    return p


# ----------------------------------------------------------------------------
if __name__ == "__main__":
    state_dim, action_dim, max_action, batch = 8, 4, 2.0, 2

    key = jax.random.PRNGKey(0)
    k_params, k_img, k_state = jax.random.split(key, 3)
    params = init_params(k_params, state_dim, action_dim)
    prep = prepare_actor(params)          # one-time weight folding, not in hot path

    # Image input in PyTorch NCHW convention and the (state_dim - 1)-column
    # state tensor the original module's layer_1 shape implies.
    x = jax.random.normal(k_img, (batch, 1, 16, 16), jnp.float32)
    state = jax.random.normal(k_state, (batch, state_dim - 1), jnp.float32)

    out = jax.block_until_ready(
        actor_forward(prep, x, state, max_action=max_action, action_dim=action_dim))

    assert out.shape == (batch, action_dim)
    assert bool(jnp.all(jnp.abs(out) <= max_action + 1e-5))

    ref = reference_forward(params, x, state, max_action)
    assert bool(jnp.allclose(out, ref, atol=5e-2, rtol=5e-2)), (
        "mismatch vs reference", out, ref)

    print("KERNEL_OK")
</pallas_src>

<mosaic_0001>
module attributes {stable_mosaic.version = 11 : i64} {
  func.func @actor_fused_kernel(%arg0: i32, %arg1: memref<32x16xf32, #tpu.memory_space<vmem>>, %arg2: memref<2x7xf32, #tpu.memory_space<vmem>>, %arg3: memref<2x18xf32, #tpu.memory_space<vmem>>, %arg4: memref<3x16x128xf32, #tpu.memory_space<vmem>>, %arg5: memref<1x128xf32, #tpu.memory_space<vmem>>, %arg6: memref<3x128x128xf32, #tpu.memory_space<vmem>>, %arg7: memref<1x128xf32, #tpu.memory_space<vmem>>, %arg8: memref<1x128xf32, #tpu.memory_space<vmem>>, %arg9: memref<3x128x128xf32, #tpu.memory_space<vmem>>, %arg10: memref<1x128xf32, #tpu.memory_space<vmem>>, %arg11: memref<1x128xf32, #tpu.memory_space<vmem>>, %arg12: memref<5x128x128xf32, #tpu.memory_space<vmem>>, %arg13: memref<128x512xf32, #tpu.memory_space<vmem>>, %arg14: memref<7x512xf32, #tpu.memory_space<vmem>>, %arg15: memref<1x512xf32, #tpu.memory_space<vmem>>, %arg16: memref<512x256xf32, #tpu.memory_space<vmem>>, %arg17: memref<1x256xf32, #tpu.memory_space<vmem>>, %arg18: memref<256x128xf32, #tpu.memory_space<vmem>>, %arg19: memref<1x128xf32, #tpu.memory_space<vmem>>, %arg20: memref<2x128xf32, #tpu.memory_space<vmem>>) attributes {dimension_semantics = [#tpu.dimension_semantics<parallel>], iteration_bounds = array<i64: 1>, scalar_prefetch = 0 : i64, scratch_operands = 0 : i64, tpu.core_type = #tpu.core_type<tc>, window_params = [{transform_indices = @transform_0, window_bounds = array<i64: 32, 16>}, {transform_indices = @transform_1, window_bounds = array<i64: 2, 7>}, {pipeline_mode = #tpu.pipeline_mode<synchronous>, transform_indices = @transform_2, window_bounds = array<i64: 2, 18>}, {pipeline_mode = #tpu.pipeline_mode<synchronous>, transform_indices = @transform_3, window_bounds = array<i64: 3, 16, 128>}, {pipeline_mode = #tpu.pipeline_mode<synchronous>, transform_indices = @transform_4, window_bounds = array<i64: 1, 128>}, {pipeline_mode = #tpu.pipeline_mode<synchronous>, transform_indices = @transform_5, window_bounds = array<i64: 3, 128, 128>}, {pipeline_mode = #tpu.pipeline_mode<synchronous>, transform_indices = @transform_6, window_bounds = array<i64: 1, 128>}, {pipeline_mode = #tpu.pipeline_mode<synchronous>, transform_indices = @transform_7, window_bounds = array<i64: 1, 128>}, {pipeline_mode = #tpu.pipeline_mode<synchronous>, transform_indices = @transform_8, window_bounds = array<i64: 3, 128, 128>}, {pipeline_mode = #tpu.pipeline_mode<synchronous>, transform_indices = @transform_9, window_bounds = array<i64: 1, 128>}, {pipeline_mode = #tpu.pipeline_mode<synchronous>, transform_indices = @transform_10, window_bounds = array<i64: 1, 128>}, {pipeline_mode = #tpu.pipeline_mode<synchronous>, transform_indices = @transform_11, window_bounds = array<i64: 5, 128, 128>}, {pipeline_mode = #tpu.pipeline_mode<synchronous>, transform_indices = @transform_12, window_bounds = array<i64: 128, 512>}, {pipeline_mode = #tpu.pipeline_mode<synchronous>, transform_indices = @transform_13, window_bounds = array<i64: 7, 512>}, {pipeline_mode = #tpu.pipeline_mode<synchronous>, transform_indices = @transform_14, window_bounds = array<i64: 1, 512>}, {pipeline_mode = #tpu.pipeline_mode<synchronous>, transform_indices = @transform_15, window_bounds = array<i64: 512, 256>}, {pipeline_mode = #tpu.pipeline_mode<synchronous>, transform_indices = @transform_16, window_bounds = array<i64: 1, 256>}, {pipeline_mode = #tpu.pipeline_mode<synchronous>, transform_indices = @transform_17, window_bounds = array<i64: 256, 128>}, {pipeline_mode = #tpu.pipeline_mode<synchronous>, transform_indices = @transform_18, window_bounds = array<i64: 1, 128>}, {transform_indices = @transform_19, window_bounds = array<i64: 2, 128>}]} {
    %c0 = arith.constant 0 : index
    %c0_0 = arith.constant 0 : index
    %0 = vector.load %arg1[%c0, %c0_0] : memref<32x16xf32, #tpu.memory_space<vmem>>, vector<32x16xf32>
    %c0_1 = arith.constant 0 : index
    %c0_2 = arith.constant 0 : index
    %c0_3 = arith.constant 0 : index
    %1 = vector.load %arg4[%c0_1, %c0_2, %c0_3] : memref<3x16x128xf32, #tpu.memory_space<vmem>>, vector<1x16x128xf32>
    %2 = vector.shape_cast %1 : vector<1x16x128xf32> to vector<16x128xf32>
    %cst = arith.constant dense<0.000000e+00> : vector<32x128xf32>
    %3 = tpu.matmul %0, %2, %cst {dimension_numbers = #tpu.dot_dimension_numbers<[1], [0], [0], [1], [0, 0, 1, 1], [], []>} : vector<32x16xf32>, vector<16x128xf32>, vector<32x128xf32> -> vector<32x128xf32>
    %c1 = arith.constant 1 : index
    %c0_4 = arith.constant 0 : index
    %c0_5 = arith.constant 0 : index
    %4 = vector.load %arg4[%c1, %c0_4, %c0_5] : memref<3x16x128xf32, #tpu.memory_space<vmem>>, vector<1x16x128xf32>
    %5 = vector.shape_cast %4 : vector<1x16x128xf32> to vector<16x128xf32>
    %cst_6 = arith.constant dense<0.000000e+00> : vector<32x128xf32>
    %6 = tpu.matmul %0, %5, %cst_6 {dimension_numbers = #tpu.dot_dimension_numbers<[1], [0], [0], [1], [0, 0, 1, 1], [], []>} : vector<32x16xf32>, vector<16x128xf32>, vector<32x128xf32> -> vector<32x128xf32>
    %c2 = arith.constant 2 : index
    %c0_7 = arith.constant 0 : index
    %c0_8 = arith.constant 0 : index
    %7 = vector.load %arg4[%c2, %c0_7, %c0_8] : memref<3x16x128xf32, #tpu.memory_space<vmem>>, vector<1x16x128xf32>
    %8 = vector.shape_cast %7 : vector<1x16x128xf32> to vector<16x128xf32>
    %cst_9 = arith.constant dense<0.000000e+00> : vector<32x128xf32>
    %9 = tpu.matmul %0, %8, %cst_9 {dimension_numbers = #tpu.dot_dimension_numbers<[1], [0], [0], [1], [0, 0, 1, 1], [], []>} : vector<32x16xf32>, vector<16x128xf32>, vector<32x128xf32> -> vector<32x128xf32>
    %10 = vector.extract_strided_slice %3 {offsets = [0, 0], sizes = [30, 128], strides = [1, 1]} : vector<32x128xf32> to vector<30x128xf32>
    %11 = vector.extract_strided_slice %6 {offsets = [1, 0], sizes = [30, 128], strides = [1, 1]} : vector<32x128xf32> to vector<30x128xf32>
    %12 = arith.addf %10, %11 : vector<30x128xf32>
    %13 = vector.extract_strided_slice %9 {offsets = [2, 0], sizes = [30, 128], strides = [1, 1]} : vector<32x128xf32> to vector<30x128xf32>
    %14 = arith.addf %12, %13 : vector<30x128xf32>
    %c0_10 = arith.constant 0 : index
    %c0_11 = arith.constant 0 : index
    %15 = vector.load %arg5[%c0_10, %c0_11] : memref<1x128xf32, #tpu.memory_space<vmem>>, vector<1x128xf32>
    %16 = vector.broadcast %15 : vector<1x128xf32> to vector<30x128xf32>
    %17 = arith.addf %14, %16 : vector<30x128xf32>
    %c0_12 = arith.constant 0 : index
    %c0_13 = arith.constant 0 : index
    %c0_14 = arith.constant 0 : index
    %18 = vector.load %arg6[%c0_12, %c0_13, %c0_14] : memref<3x128x128xf32, #tpu.memory_space<vmem>>, vector<1x128x128xf32>
    %19 = vector.shape_cast %18 : vector<1x128x128xf32> to vector<128x128xf32>
    %cst_15 = arith.constant dense<0.000000e+00> : vector<30x128xf32>
    %20 = tpu.matmul %17, %19, %cst_15 {dimension_numbers = #tpu.dot_dimension_numbers<[1], [0], [0], [1], [0, 0, 1, 1], [], []>} : vector<30x128xf32>, vector<128x128xf32>, vector<30x128xf32> -> vector<30x128xf32>
    %c1_16 = arith.constant 1 : index
    %c0_17 = arith.constant 0 : index
    %c0_18 = arith.constant 0 : index
    %21 = vector.load %arg6[%c1_16, %c0_17, %c0_18] : memref<3x128x128xf32, #tpu.memory_space<vmem>>, vector<1x128x128xf32>
    %22 = vector.shape_cast %21 : vector<1x128x128xf32> to vector<128x128xf32>
    %cst_19 = arith.constant dense<0.000000e+00> : vector<30x128xf32>
    %23 = tpu.matmul %17, %22, %cst_19 {dimension_numbers = #tpu.dot_dimension_numbers<[1], [0], [0], [1], [0, 0, 1, 1], [], []>} : vector<30x128xf32>, vector<128x128xf32>, vector<30x128xf32> -> vector<30x128xf32>
    %c2_20 = arith.constant 2 : index
    %c0_21 = arith.constant 0 : index
    %c0_22 = arith.constant 0 : index
    %24 = vector.load %arg6[%c2_20, %c0_21, %c0_22] : memref<3x128x128xf32, #tpu.memory_space<vmem>>, vector<1x128x128xf32>
    %25 = vector.shape_cast %24 : vector<1x128x128xf32> to vector<128x128xf32>
    %cst_23 = arith.constant dense<0.000000e+00> : vector<30x128xf32>
    %26 = tpu.matmul %17, %25, %cst_23 {dimension_numbers = #tpu.dot_dimension_numbers<[1], [0], [0], [1], [0, 0, 1, 1], [], []>} : vector<30x128xf32>, vector<128x128xf32>, vector<30x128xf32> -> vector<30x128xf32>
    %27 = vector.extract_strided_slice %20 {offsets = [0, 0], sizes = [28, 128], strides = [1, 1]} : vector<30x128xf32> to vector<28x128xf32>
    %28 = vector.extract_strided_slice %23 {offsets = [1, 0], sizes = [28, 128], strides = [1, 1]} : vector<30x128xf32> to vector<28x128xf32>
    %29 = arith.addf %27, %28 : vector<28x128xf32>
    %30 = vector.extract_strided_slice %26 {offsets = [2, 0], sizes = [28, 128], strides = [1, 1]} : vector<30x128xf32> to vector<28x128xf32>
    %31 = arith.addf %29, %30 : vector<28x128xf32>
    %cst_24 = arith.constant 0.000000e+00 : f32
    %32 = vector.broadcast %cst_24 : f32 to vector<28x128xf32>
    %33 = arith.maximumf %31, %32 : vector<28x128xf32>
    %c0_25 = arith.constant 0 : index
    %c0_26 = arith.constant 0 : index
    %34 = vector.load %arg7[%c0_25, %c0_26] : memref<1x128xf32, #tpu.memory_space<vmem>>, vector<1x128xf32>
    %35 = vector.broadcast %34 : vector<1x128xf32> to vector<28x128xf32>
    %36 = arith.mulf %33, %35 : vector<28x128xf32>
    %c0_27 = arith.constant 0 : index
    %c0_28 = arith.constant 0 : index
    %37 = vector.load %arg8[%c0_27, %c0_28] : memref<1x128xf32, #tpu.memory_space<vmem>>, vector<1x128xf32>
    %38 = vector.broadcast %37 : vector<1x128xf32> to vector<28x128xf32>
    %39 = arith.addf %36, %38 : vector<28x128xf32>
    %c0_29 = arith.constant 0 : index
    %c0_30 = arith.constant 0 : index
    %c0_31 = arith.constant 0 : index
    %40 = vector.load %arg9[%c0_29, %c0_30, %c0_31] : memref<3x128x128xf32, #tpu.memory_space<vmem>>, vector<1x128x128xf32>
    %41 = vector.shape_cast %40 : vector<1x128x128xf32> to vector<128x128xf32>
    %cst_32 = arith.constant dense<0.000000e+00> : vector<28x128xf32>
    %42 = tpu.matmul %39, %41, %cst_32 {dimension_numbers = #tpu.dot_dimension_numbers<[1], [0], [0], [1], [0, 0, 1, 1], [], []>} : vector<28x128xf32>, vector<128x128xf32>, vector<28x128xf32> -> vector<28x128xf32>
    %c1_33 = arith.constant 1 : index
    %c0_34 = arith.constant 0 : index
    %c0_35 = arith.constant 0 : index
    %43 = vector.load %arg9[%c1_33, %c0_34, %c0_35] : memref<3x128x128xf32, #tpu.memory_space<vmem>>, vector<1x128x128xf32>
    %44 = vector.shape_cast %43 : vector<1x128x128xf32> to vector<128x128xf32>
    %cst_36 = arith.constant dense<0.000000e+00> : vector<28x128xf32>
    %45 = tpu.matmul %39, %44, %cst_36 {dimension_numbers = #tpu.dot_dimension_numbers<[1], [0], [0], [1], [0, 0, 1, 1], [], []>} : vector<28x128xf32>, vector<128x128xf32>, vector<28x128xf32> -> vector<28x128xf32>
    %c2_37 = arith.constant 2 : index
    %c0_38 = arith.constant 0 : index
    %c0_39 = arith.constant 0 : index
    %46 = vector.load %arg9[%c2_37, %c0_38, %c0_39] : memref<3x128x128xf32, #tpu.memory_space<vmem>>, vector<1x128x128xf32>
    %47 = vector.shape_cast %46 : vector<1x128x128xf32> to vector<128x128xf32>
    %cst_40 = arith.constant dense<0.000000e+00> : vector<28x128xf32>
    %48 = tpu.matmul %39, %47, %cst_40 {dimension_numbers = #tpu.dot_dimension_numbers<[1], [0], [0], [1], [0, 0, 1, 1], [], []>} : vector<28x128xf32>, vector<128x128xf32>, vector<28x128xf32> -> vector<28x128xf32>
    %49 = vector.extract_strided_slice %42 {offsets = [0, 0], sizes = [26, 128], strides = [1, 1]} : vector<28x128xf32> to vector<26x128xf32>
    %50 = vector.extract_strided_slice %45 {offsets = [1, 0], sizes = [26, 128], strides = [1, 1]} : vector<28x128xf32> to vector<26x128xf32>
    %51 = arith.addf %49, %50 : vector<26x128xf32>
    %52 = vector.extract_strided_slice %48 {offsets = [2, 0], sizes = [26, 128], strides = [1, 1]} : vector<28x128xf32> to vector<26x128xf32>
    %53 = arith.addf %51, %52 : vector<26x128xf32>
    %cst_41 = arith.constant 0.000000e+00 : f32
    %54 = vector.broadcast %cst_41 : f32 to vector<26x128xf32>
    %55 = arith.maximumf %53, %54 : vector<26x128xf32>
    %c0_42 = arith.constant 0 : index
    %c0_43 = arith.constant 0 : index
    %56 = vector.load %arg10[%c0_42, %c0_43] : memref<1x128xf32, #tpu.memory_space<vmem>>, vector<1x128xf32>
    %57 = vector.broadcast %56 : vector<1x128xf32> to vector<26x128xf32>
    %58 = arith.mulf %55, %57 : vector<26x128xf32>
    %c0_44 = arith.constant 0 : index
    %c0_45 = arith.constant 0 : index
    %59 = vector.load %arg11[%c0_44, %c0_45] : memref<1x128xf32, #tpu.memory_space<vmem>>, vector<1x128xf32>
    %60 = vector.broadcast %59 : vector<1x128xf32> to vector<26x128xf32>
    %61 = arith.addf %58, %60 : vector<26x128xf32>
    %c0_46 = arith.constant 0 : index
    %c0_47 = arith.constant 0 : index
    %c0_48 = arith.constant 0 : index
    %62 = vector.load %arg12[%c0_46, %c0_47, %c0_48] : memref<5x128x128xf32, #tpu.memory_space<vmem>>, vector<1x128x128xf32>
    %63 = vector.shape_cast %62 : vector<1x128x128xf32> to vector<128x128xf32>
    %cst_49 = arith.constant dense<0.000000e+00> : vector<26x128xf32>
    %64 = tpu.matmul %61, %63, %cst_49 {dimension_numbers = #tpu.dot_dimension_numbers<[1], [0], [0], [1], [0, 0, 1, 1], [], []>} : vector<26x128xf32>, vector<128x128xf32>, vector<26x128xf32> -> vector<26x128xf32>
    %c1_50 = arith.constant 1 : index
    %c0_51 = arith.constant 0 : index
    %c0_52 = arith.constant 0 : index
    %65 = vector.load %arg12[%c1_50, %c0_51, %c0_52] : memref<5x128x128xf32, #tpu.memory_space<vmem>>, vector<1x128x128xf32>
    %66 = vector.shape_cast %65 : vector<1x128x128xf32> to vector<128x128xf32>
    %cst_53 = arith.constant dense<0.000000e+00> : vector<26x128xf32>
    %67 = tpu.matmul %61, %66, %cst_53 {dimension_numbers = #tpu.dot_dimension_numbers<[1], [0], [0], [1], [0, 0, 1, 1], [], []>} : vector<26x128xf32>, vector<128x128xf32>, vector<26x128xf32> -> vector<26x128xf32>
    %c2_54 = arith.constant 2 : index
    %c0_55 = arith.constant 0 : index
    %c0_56 = arith.constant 0 : index
    %68 = vector.load %arg12[%c2_54, %c0_55, %c0_56] : memref<5x128x128xf32, #tpu.memory_space<vmem>>, vector<1x128x128xf32>
    %69 = vector.shape_cast %68 : vector<1x128x128xf32> to vector<128x128xf32>
    %cst_57 = arith.constant dense<0.000000e+00> : vector<26x128xf32>
    %70 = tpu.matmul %61, %69, %cst_57 {dimension_numbers = #tpu.dot_dimension_numbers<[1], [0], [0], [1], [0, 0, 1, 1], [], []>} : vector<26x128xf32>, vector<128x128xf32>, vector<26x128xf32> -> vector<26x128xf32>
    %c3 = arith.constant 3 : index
    %c0_58 = arith.constant 0 : index
    %c0_59 = arith.constant 0 : index
    %71 = vector.load %arg12[%c3, %c0_58, %c0_59] : memref<5x128x128xf32, #tpu.memory_space<vmem>>, vector<1x128x128xf32>
    %72 = vector.shape_cast %71 : vector<1x128x128xf32> to vector<128x128xf32>
    %cst_60 = arith.constant dense<0.000000e+00> : vector<26x128xf32>
    %73 = tpu.matmul %61, %72, %cst_60 {dimension_numbers = #tpu.dot_dimension_numbers<[1], [0], [0], [1], [0, 0, 1, 1], [], []>} : vector<26x128xf32>, vector<128x128xf32>, vector<26x128xf32> -> vector<26x128xf32>
    %c4 = arith.constant 4 : index
    %c0_61 = arith.constant 0 : index
    %c0_62 = arith.constant 0 : index
    %74 = vector.load %arg12[%c4, %c0_61, %c0_62] : memref<5x128x128xf32, #tpu.memory_space<vmem>>, vector<1x128x128xf32>
    %75 = vector.shape_cast %74 : vector<1x128x128xf32> to vector<128x128xf32>
    %cst_63 = arith.constant dense<0.000000e+00> : vector<26x128xf32>
    %76 = tpu.matmul %61, %75, %cst_63 {dimension_numbers = #tpu.dot_dimension_numbers<[1], [0], [0], [1], [0, 0, 1, 1], [], []>} : vector<26x128xf32>, vector<128x128xf32>, vector<26x128xf32> -> vector<26x128xf32>
    %77 = vector.extract_strided_slice %64 {offsets = [0, 0], sizes = [18, 128], strides = [1, 1]} : vector<26x128xf32> to vector<18x128xf32>
    %78 = vector.extract_strided_slice %67 {offsets = [2, 0], sizes = [18, 128], strides = [1, 1]} : vector<26x128xf32> to vector<18x128xf32>
    %79 = arith.addf %77, %78 : vector<18x128xf32>
    %80 = vector.extract_strided_slice %70 {offsets = [4, 0], sizes = [18, 128], strides = [1, 1]} : vector<26x128xf32> to vector<18x128xf32>
    %81 = arith.addf %79, %80 : vector<18x128xf32>
    %82 = vector.extract_strided_slice %73 {offsets = [6, 0], sizes = [18, 128], strides = [1, 1]} : vector<26x128xf32> to vector<18x128xf32>
    %83 = arith.addf %81, %82 : vector<18x128xf32>
    %84 = vector.extract_strided_slice %76 {offsets = [8, 0], sizes = [18, 128], strides = [1, 1]} : vector<26x128xf32> to vector<18x128xf32>
    %85 = arith.addf %83, %84 : vector<18x128xf32>
    %c0_64 = arith.constant 0 : index
    %c0_65 = arith.constant 0 : index
    %86 = vector.load %arg3[%c0_64, %c0_65] : memref<2x18xf32, #tpu.memory_space<vmem>>, vector<2x18xf32>
    %cst_66 = arith.constant dense<0.000000e+00> : vector<2x128xf32>
    %87 = tpu.matmul %86, %85, %cst_66 {dimension_numbers = #tpu.dot_dimension_numbers<[1], [0], [0], [1], [0, 0, 1, 1], [], []>} : vector<2x18xf32>, vector<18x128xf32>, vector<2x128xf32> -> vector<2x128xf32>
    %c0_67 = arith.constant 0 : index
    %c0_68 = arith.constant 0 : index
    %88 = vector.load %arg13[%c0_67, %c0_68] : memref<128x512xf32, #tpu.memory_space<vmem>>, vector<128x512xf32>
    %cst_69 = arith.constant dense<0.000000e+00> : vector<2x512xf32>
    %89 = tpu.matmul %87, %88, %cst_69 {dimension_numbers = #tpu.dot_dimension_numbers<[1], [0], [0], [1], [0, 0, 1, 1], [], []>} : vector<2x128xf32>, vector<128x512xf32>, vector<2x512xf32> -> vector<2x512xf32>
    %c0_70 = arith.constant 0 : index
    %c0_71 = arith.constant 0 : index
    %90 = vector.load %arg2[%c0_70, %c0_71] : memref<2x7xf32, #tpu.memory_space<vmem>>, vector<2x7xf32>
    %c0_72 = arith.constant 0 : index
    %c0_73 = arith.constant 0 : index
    %91 = vector.load %arg14[%c0_72, %c0_73] : memref<7x512xf32, #tpu.memory_space<vmem>>, vector<7x512xf32>
    %cst_74 = arith.constant dense<0.000000e+00> : vector<2x512xf32>
    %92 = tpu.matmul %90, %91, %cst_74 {dimension_numbers = #tpu.dot_dimension_numbers<[1], [0], [0], [1], [0, 0, 1, 1], [], []>} : vector<2x7xf32>, vector<7x512xf32>, vector<2x512xf32> -> vector<2x512xf32>
    %93 = arith.addf %89, %92 : vector<2x512xf32>
    %c0_75 = arith.constant 0 : index
    %c0_76 = arith.constant 0 : index
    %94 = vector.load %arg15[%c0_75, %c0_76] : memref<1x512xf32, #tpu.memory_space<vmem>>, vector<1x512xf32>
    %95 = vector.broadcast %94 : vector<1x512xf32> to vector<2x512xf32>
    %96 = arith.addf %93, %95 : vector<2x512xf32>
    %cst_77 = arith.constant 0.000000e+00 : f32
    %97 = vector.broadcast %cst_77 : f32 to vector<2x512xf32>
    %98 = arith.maximumf %96, %97 : vector<2x512xf32>
    %c0_78 = arith.constant 0 : index
    %c0_79 = arith.constant 0 : index
    %99 = vector.load %arg16[%c0_78, %c0_79] : memref<512x256xf32, #tpu.memory_space<vmem>>, vector<512x256xf32>
    %cst_80 = arith.constant dense<0.000000e+00> : vector<2x256xf32>
    %100 = tpu.matmul %98, %99, %cst_80 {dimension_numbers = #tpu.dot_dimension_numbers<[1], [0], [0], [1], [0, 0, 1, 1], [], []>} : vector<2x512xf32>, vector<512x256xf32>, vector<2x256xf32> -> vector<2x256xf32>
    %c0_81 = arith.constant 0 : index
    %c0_82 = arith.constant 0 : index
    %101 = vector.load %arg17[%c0_81, %c0_82] : memref<1x256xf32, #tpu.memory_space<vmem>>, vector<1x256xf32>
    %102 = vector.broadcast %101 : vector<1x256xf32> to vector<2x256xf32>
    %103 = arith.addf %100, %102 : vector<2x256xf32>
    %cst_83 = arith.constant 0.000000e+00 : f32
    %104 = vector.broadcast %cst_83 : f32 to vector<2x256xf32>
    %105 = arith.maximumf %103, %104 : vector<2x256xf32>
    %c0_84 = arith.constant 0 : index
    %c0_85 = arith.constant 0 : index
    %106 = vector.load %arg18[%c0_84, %c0_85] : memref<256x128xf32, #tpu.memory_space<vmem>>, vector<256x128xf32>
    %cst_86 = arith.constant dense<0.000000e+00> : vector<2x128xf32>
    %107 = tpu.matmul %105, %106, %cst_86 {dimension_numbers = #tpu.dot_dimension_numbers<[1], [0], [0], [1], [0, 0, 1, 1], [], []>} : vector<2x256xf32>, vector<256x128xf32>, vector<2x128xf32> -> vector<2x128xf32>
    %c0_87 = arith.constant 0 : index
    %c0_88 = arith.constant 0 : index
    %108 = vector.load %arg19[%c0_87, %c0_88] : memref<1x128xf32, #tpu.memory_space<vmem>>, vector<1x128xf32>
    %109 = vector.broadcast %108 : vector<1x128xf32> to vector<2x128xf32>
    %110 = arith.addf %107, %109 : vector<2x128xf32>
    %111 = math.tanh %110 : vector<2x128xf32>
    %cst_89 = arith.constant 2.000000e+00 : f32
    %112 = vector.broadcast %cst_89 : f32 to vector<2x128xf32>
    %113 = arith.mulf %112, %111 : vector<2x128xf32>
    %c0_90 = arith.constant 0 : index
    %c0_91 = arith.constant 0 : index
    %114 = vector.load %arg20[%c0_90, %c0_91] : memref<2x128xf32, #tpu.memory_space<vmem>>, vector<2x128xf32>
    tpu.vector_store %arg20[%c0_90, %c0_91], %113 {strides = array<i32>} : memref<2x128xf32, #tpu.memory_space<vmem>>, vector<2x128xf32>,
    return
  }
  func.func @transform_0(%arg0: i32) -> (i32, i32) {
    %c0_i32 = arith.constant 0 : i32
    %c0_i32_0 = arith.constant 0 : i32
    return %arg0, %c0_i32 : i32, i32
  }
  func.func @transform_1(%arg0: i32) -> (i32, i32) {
    %c0_i32 = arith.constant 0 : i32
    %c0_i32_0 = arith.constant 0 : i32
    return %arg0, %c0_i32 : i32, i32
  }
  func.func @transform_2(%arg0: i32) -> (i32, i32) {
    %c0_i32 = arith.constant 0 : i32
    %c0_i32_0 = arith.constant 0 : i32
    %c0_i32_1 = arith.constant 0 : i32
    return %c0_i32, %c0_i32_0 : i32, i32
  }
  func.func @transform_3(%arg0: i32) -> (i32, i32, i32) {
    %c0_i32 = arith.constant 0 : i32
    %c0_i32_0 = arith.constant 0 : i32
    %c0_i32_1 = arith.constant 0 : i32
    %c0_i32_2 = arith.constant 0 : i32
    return %c0_i32, %c0_i32_0, %c0_i32_1 : i32, i32, i32
  }
  func.func @transform_4(%arg0: i32) -> (i32, i32) {
    %c0_i32 = arith.constant 0 : i32
    %c0_i32_0 = arith.constant 0 : i32
    %c0_i32_1 = arith.constant 0 : i32
    return %c0_i32, %c0_i32_0 : i32, i32
  }
  func.func @transform_5(%arg0: i32) -> (i32, i32, i32) {
    %c0_i32 = arith.constant 0 : i32
    %c0_i32_0 = arith.constant 0 : i32
    %c0_i32_1 = arith.constant 0 : i32
    %c0_i32_2 = arith.constant 0 : i32
    return %c0_i32, %c0_i32_0, %c0_i32_1 : i32, i32, i32
  }
  func.func @transform_6(%arg0: i32) -> (i32, i32) {
    %c0_i32 = arith.constant 0 : i32
    %c0_i32_0 = arith.constant 0 : i32
    %c0_i32_1 = arith.constant 0 : i32
    return %c0_i32, %c0_i32_0 : i32, i32
  }
  func.func @transform_7(%arg0: i32) -> (i32, i32) {
    %c0_i32 = arith.constant 0 : i32
    %c0_i32_0 = arith.constant 0 : i32
    %c0_i32_1 = arith.constant 0 : i32
    return %c0_i32, %c0_i32_0 : i32, i32
  }
  func.func @transform_8(%arg0: i32) -> (i32, i32, i32) {
    %c0_i32 = arith.constant 0 : i32
    %c0_i32_0 = arith.constant 0 : i32
    %c0_i32_1 = arith.constant 0 : i32
    %c0_i32_2 = arith.constant 0 : i32
    return %c0_i32, %c0_i32_0, %c0_i32_1 : i32, i32, i32
  }
  func.func @transform_9(%arg0: i32) -> (i32, i32) {
    %c0_i32 = arith.constant 0 : i32
    %c0_i32_0 = arith.constant 0 : i32
    %c0_i32_1 = arith.constant 0 : i32
    return %c0_i32, %c0_i32_0 : i32, i32
  }
  func.func @transform_10(%arg0: i32) -> (i32, i32) {
    %c0_i32 = arith.constant 0 : i32
    %c0_i32_0 = arith.constant 0 : i32
    %c0_i32_1 = arith.constant 0 : i32
    return %c0_i32, %c0_i32_0 : i32, i32
  }
  func.func @transform_11(%arg0: i32) -> (i32, i32, i32) {
    %c0_i32 = arith.constant 0 : i32
    %c0_i32_0 = arith.constant 0 : i32
    %c0_i32_1 = arith.constant 0 : i32
    %c0_i32_2 = arith.constant 0 : i32
    return %c0_i32, %c0_i32_0, %c0_i32_1 : i32, i32, i32
  }
  func.func @transform_12(%arg0: i32) -> (i32, i32) {
    %c0_i32 = arith.constant 0 : i32
    %c0_i32_0 = arith.constant 0 : i32
    %c0_i32_1 = arith.constant 0 : i32
    return %c0_i32, %c0_i32_0 : i32, i32
  }
  func.func @transform_13(%arg0: i32) -> (i32, i32) {
    %c0_i32 = arith.constant 0 : i32
    %c0_i32_0 = arith.constant 0 : i32
    %c0_i32_1 = arith.constant 0 : i32
    return %c0_i32, %c0_i32_0 : i32, i32
  }
  func.func @transform_14(%arg0: i32) -> (i32, i32) {
    %c0_i32 = arith.constant 0 : i32
    %c0_i32_0 = arith.constant 0 : i32
    %c0_i32_1 = arith.constant 0 : i32
    return %c0_i32, %c0_i32_0 : i32, i32
  }
  func.func @transform_15(%arg0: i32) -> (i32, i32) {
    %c0_i32 = arith.constant 0 : i32
    %c0_i32_0 = arith.constant 0 : i32
    %c0_i32_1 = arith.constant 0 : i32
    return %c0_i32, %c0_i32_0 : i32, i32
  }
  func.func @transform_16(%arg0: i32) -> (i32, i32) {
    %c0_i32 = arith.constant 0 : i32
    %c0_i32_0 = arith.constant 0 : i32
    %c0_i32_1 = arith.constant 0 : i32
    return %c0_i32, %c0_i32_0 : i32, i32
  }
  func.func @transform_17(%arg0: i32) -> (i32, i32) {
    %c0_i32 = arith.constant 0 : i32
    %c0_i32_0 = arith.constant 0 : i32
    %c0_i32_1 = arith.constant 0 : i32
    return %c0_i32, %c0_i32_0 : i32, i32
  }
  func.func @transform_18(%arg0: i32) -> (i32, i32) {
    %c0_i32 = arith.constant 0 : i32
    %c0_i32_0 = arith.constant 0 : i32
    %c0_i32_1 = arith.constant 0 : i32
    return %c0_i32, %c0_i32_0 : i32, i32
  }
  func.func @transform_19(%arg0: i32) -> (i32, i32) {
    %c0_i32 = arith.constant 0 : i32
    %c0_i32_0 = arith.constant 0 : i32
    return %arg0, %c0_i32 : i32, i32
  }
}

</mosaic_0001>

<bundles_post_ra>
// kernel: actor_forward.1
= control target key start
LH: loop header
LB: loop body
LE: loop exit
PB: predicated region body
PF: predicated region fallthrough
CT: control target
= control target key end

     0   :  { %s2343_s0 = inlined_call_operand.hbm [shape: f32[32,16], index: 0, kind: input, shape index: {}]   ;;  %s2344_s1 = inlined_call_operand.vmem [shape: f32[2,7], index: 1, kind: input, shape index: {}]   ;;  %s2345_s2 = inlined_call_operand.vmem [shape: f32[2,18], index: 2, kind: input, shape index: {}]   ;;  %s2346_s3 = inlined_call_operand.hbm [shape: f32[3,16,128], index: 3, kind: input, shape index: {}]   ;;  %s2347_s4 = inlined_call_operand.vmem [shape: f32[1,128], index: 4, kind: input, shape index: {}]   ;;  %s2348_s5 = inlined_call_operand.hbm [shape: f32[3,128,128], index: 5, kind: input, shape index: {}]   ;;  %s2349_s6 = inlined_call_operand.vmem [shape: f32[1,128], index: 6, kind: input, shape index: {}]   ;;  %s2350_s7 = inlined_call_operand.vmem [shape: f32[1,128], index: 7, kind: input, shape index: {}]   ;;  %s2351_s8 = inlined_call_operand.hbm [shape: f32[3,128,128], index: 8, kind: input, shape index: {}]   ;;  %s2352_s9 = inlined_call_operand.vmem [shape: f32[1,128], index: 9, kind: input, shape index: {}]   ;;  %s2353_s10 = inlined_call_operand.vmem [shape: f32[1,128], index: 10, kind: input, shape index: {}]   ;;  %s2354_s11 = inlined_call_operand.hbm [shape: f32[5,128,128], index: 11, kind: input, shape index: {}]   ;;  %s2355_s12 = inlined_call_operand.hbm [shape: f32[128,512], index: 12, kind: input, shape index: {}]   ;;  %s2356_s13 = inlined_call_operand.hbm [shape: f32[7,512], index: 13, kind: input, shape index: {}]   ;;  %s2357_s14 = inlined_call_operand.vmem [shape: f32[1,512], index: 14, kind: input, shape index: {}]   ;;  %s2358_s15 = inlined_call_operand.hbm [shape: f32[512,256], index: 15, kind: input, shape index: {}]   ;;  %s2359_s16 = inlined_call_operand.hbm [shape: f32[1,256], index: 16, kind: input, shape index: {}]   ;;  %s2360_s17 = inlined_call_operand.hbm [shape: f32[256,128], index: 17, kind: input, shape index: {}]   ;;  %s2361_s18 = inlined_call_operand.hbm [shape: f32[1,128], index: 18, kind: input, shape index: {}]   ;;  %s2362_s19 = inlined_call_operand.hbm [shape: f32[2,128], index: 19, kind: output, shape index: {}]  }
   0x1   :  { %2365 = sst [smem:[#allocation28_spill]] %s2343_s0 }
   0x2   :  { %2366 = sst [smem:[#allocation29_spill]] %s2344_s1 }
   0x3   :  { %2367 = sst [smem:[#allocation30_spill]] %s2345_s2 }
   0x4   :  { %2368 = sst [smem:[#allocation31_spill]] %s2346_s3 }
   0x5   :  { %2369 = sst [smem:[#allocation32_spill]] %s2362_s19 }
   0x6   :  { %24 = vsyncpa [#allocation3], 0 }
   0x7   :  { %25 = vsyncpa [#allocation6], 0 }
   0x8   :  { %26 = vsyncpa [#allocation9], 0 }
   0x9   :  { %27 = vsyncpa [#allocation12], 0 }
   0xa   :  { %28 = vsyncpa [#allocation15], 0 }
   0xb   :  { %29 = vsyncpa [#allocation18], 0 }
   0xc   :  { %30 = vsyncpa [#allocation4], 0  ;;  %s2370_s20 = sld [smem:[#allocation31_spill]]  ;;  %s2087_s1 = smov [#allocation5]  }
   0xd   :  { %s54_s22 = sshll.u32 %s2087_s1, 4  ;;  %s84_s24 = sshll.u32 %s2351_s8, 4  ;;  %s55_s22 = int_to_ptr.vmem [resolvable:$true] %s54_s22  ;;  %s85_s24 = int_to_ptr.hbm [resolvable:$true] %s84_s24 }
   0xe   :  { %s2363_s25 = smov 128   ;;  %s2089_s3 = smov 8  }
   0xf   :  { %s2090_s26 = smov [#allocation8]   ;;  %s114_s0 = sshll.u32 %s2355_s12, 4  ;;  %s115_s0 = int_to_ptr.hbm [resolvable:$true] %s114_s0 }
  0x10   :  { %s86_s27 = sshll.u32 %s2090_s26, 4  ;;  %s2091_s8 = smov [#allocation11]   ;;  %s87_s27 = int_to_ptr.vmem [resolvable:$true] %s86_s27 }
  0x11   :  { %92 = dma.hbm_to_vmem [thread:$0]  %s85_s24, 6144, %s87_s27, [#allocation9], %s2363_s25, %s2363_s25, %s2089_s3  }
  0x12   :  { %s52_s21 = sshll.u32 %s2370_s20, 4  ;;  %s116_s30 = sshll.u32 %s2091_s8, 4  ;;  %s53_s21 = int_to_ptr.hbm [resolvable:$true] %s52_s21  ;;  %s117_s30 = int_to_ptr.vmem [resolvable:$true] %s116_s30 }
  0x13   :  { %60 = dma.hbm_to_vmem [thread:$0]  %s53_s21, 768, %s55_s22, [#allocation6], %s2363_s25, %s2363_s25, %s2089_s3  }
  0x14   :  { %s140_s21 = sshll.u32 %s2358_s15, 4  ;;  %s2092_s22 = smov 512   ;;  %s141_s21 = int_to_ptr.hbm [resolvable:$true] %s140_s21 }
  0x15   :  { %s2093_s2 = smov 32   ;;  %s2094_s23 = smov [#allocation14]  }
  0x16   :  { %122 = dma.hbm_to_vmem [thread:$0]  %s115_s0, 8192, %s117_s30, [#allocation12], %s2092_s22, %s2092_s22, %s2093_s2  }
  0x17   :  { %s142_s26 = sshll.u32 %s2094_s23, 4  ;;  %s2095_s12 = smov 256   ;;  %s143_s26 = int_to_ptr.vmem [resolvable:$true] %s142_s26 }
  0x18   :  { %s2096_s28 = smov 16   ;;  %s164_s24 = sshll.u32 %s2360_s17, 4  ;;  %s165_s24 = int_to_ptr.hbm [resolvable:$true] %s164_s24 }
  0x19   :  { %148 = dma.hbm_to_vmem [thread:$0]  %s141_s21, 16384, %s143_s26, [#allocation15], %s2095_s12, %s2095_s12, %s2096_s28  }
  0x1a   :  { %s2097_s27 = smov [#allocation17]   ;;  %s2371_s1 = sld [smem:[#allocation28_spill]] }
  0x1b   :  { %s166_s8 = sshll.u32 %s2097_s27, 4  ;;  %s2372_s0 = smov 128   ;;  %s167_s8 = int_to_ptr.vmem [resolvable:$true] %s166_s8 }
  0x1c   :  { %172 = dma.hbm_to_vmem [thread:$0]  %s165_s24, 4096, %s167_s8, [#allocation18], %s2372_s0, %s2372_s0, %s2089_s3  }
  0x1d   :  { %s2098_s30 = smov [#allocation2]   ;;  %s67_s19 = sshll.u32 %s2348_s5, 4  ;;  %s68_s19 = int_to_ptr.hbm [resolvable:$true] %s67_s19 }
  0x1e   :  { %s37_s22 = sshll.u32 %s2098_s30, 4  ;;  %s101_s26 = sshll.u32 %s2354_s11, 4  ;;  %s38_s22 = int_to_ptr.vmem [resolvable:$true] %s37_s22  ;;  %s102_s26 = int_to_ptr.hbm [resolvable:$true] %s101_s26 }
  0x1f   :  { %s2099_s12 = smov [#allocation7]   ;;  %s2100_s29 = smov [#allocation10]  }
  0x20   :  { %s35_s25 = sshll.u32 %s2371_s1, 4  ;;  %s69_s28 = sshll.u32 %s2099_s12, 4  ;;  %s36_s25 = int_to_ptr.hbm [resolvable:$true] %s35_s25  ;;  %s70_s28 = int_to_ptr.vmem [resolvable:$true] %s69_s28 }
  0x21   :  { %43 = dma.hbm_to_vmem [thread:$0]  %s36_s25, 512, %s38_s22, [#allocation3], %s2372_s0, %s2372_s0, %s2089_s3  }
  0x22   :  { %75 = dma.hbm_to_vmem [thread:$0]  %s68_s19, 6144, %s70_s28, [#allocation6], %s2372_s0, %s2372_s0, %s2089_s3  }
  0x23   :  { %s103_s5 = sshll.u32 %s2100_s29, 4  ;;  %s128_s8 = sshll.u32 %s2356_s13, 4  ;;  %s104_s5 = int_to_ptr.vmem [resolvable:$true] %s103_s5  ;;  %s129_s8 = int_to_ptr.hbm [resolvable:$true] %s128_s8 }
  0x24   :  { %109 = dma.hbm_to_vmem [thread:$0]  %s102_s26, 10240, %s104_s5, [#allocation9], %s2372_s0, %s2372_s0, %s2089_s3  }
  0x25   :  { %s154_s20 = sshll.u32 %s2359_s16, 4  ;;  %s2101_s15 = smov [#allocation13]   ;;  %s155_s20 = int_to_ptr.hbm [resolvable:$true] %s154_s20 }
  0x26   :  { %s130_s1 = sshll.u32 %s2101_s15, 4  ;;  %s2102_s30 = smov [#allocation16]   ;;  %s131_s1 = int_to_ptr.vmem [resolvable:$true] %s130_s1 }
  0x27   :  { %133 = dma.hbm_to_vmem [thread:$0]  %s129_s8, 512, %s131_s1, [#allocation12]  }
  0x28   :  { %s156_s22 = sshll.u32 %s2102_s30, 4  ;;  %s178_s13 = sshll.u32 %s2361_s18, 4  ;;  %s157_s22 = int_to_ptr.vmem [resolvable:$true] %s156_s22  ;;  %s179_s13 = int_to_ptr.hbm [resolvable:$true] %s178_s13 }
  0x29   :  { %159 = dma.hbm_to_vmem [thread:$0]  %s155_s20, 32, %s157_s22, [#allocation15]  }
  0x2a   :  { %s2103_s19 = smov [#allocation19]  }
  0x2b   :  { %s180_s3 = sshll.u32 %s2103_s19, 4  ;;  %s181_s3 = int_to_ptr.vmem [resolvable:$true] %s180_s3 }
  0x2c   :  { %183 = dma.hbm_to_vmem [thread:$0]  %s179_s13, 16, %s181_s3, [#allocation18]  }
  0x2d   :  { %2073 = dma.done.wait [#allocation3], 512  }
  0x2e   :  { %2074 = vsyncadd [#allocation3], 4294966784 }
  0x2f   :  { %2075 = dma.done.wait [#allocation6], 6912  }
  0x30   :  { %2076 = vsyncadd [#allocation6], 4294960384 }
  0x31   :  { %2077 = dma.done.wait [#allocation9], 16384  }
  0x32   :  { %2078 = vsyncadd [#allocation9], 4294950912 }
  0x33   :  { %2079 = dma.done.wait [#allocation12], 8704  }
  0x34   :  { %2080 = vsyncadd [#allocation12], 4294958592 }
  0x35   :  { %2081 = dma.done.wait [#allocation15], 16416  }
  0x36   :  { %2082 = vsyncadd [#allocation15], 4294950880 }
  0x37   :  { %2083 = dma.done.wait [#allocation18], 4112  }
  0x38   :  { %2084 = vsyncadd [#allocation18], 4294963184  ;;  %v278_v0 = vld [vmem:[#allocation5 + $0x18] sm:$0xff]  ;;  %v310_v1 = vld [vmem:[#allocation5 + $0x28] sm:$0xff]  ;;  %vm234_vm0 = vcmask 130048   ;;  %vm344_vm1 = vcmask 1046528  }
  0x39   :  { %v277_v2 = vld [vmem:[#allocation5 + $0x10] sm:$0xff]  ;;  %293 = vmatpush.msra.mxu1 %v278_v0  ;;  %325 = vmatpush.msra.mxu2 %v310_v1  ;;  %v309_v3 = vld [vmem:[#allocation5 + $0x20] sm:$0xff]  ;;  %v233_v5 = vld [vmem:[#allocation5 + $0x8] sm:$0xff]  ;;  %vm364_vm2 = vcmask 1045504   ;;  %vm1019_vm3 = vcmask 1043456   ;;  %vm1034_vm4 = vcmask 1041408  }
  0x3a   :  { %v228_v4 = vld [vmem:[#allocation2] sm:$0xff]  ;;  %261 = vmatpush.msra.mxu0 %v233_v5  ;;  %v403_v7 = vld [vmem:[#allocation7 + $0x78] sm:$0xff]  ;;  %v401_v13 = vld [vmem:[#allocation7 + $0x68] sm:$0xff]  ;;  %s2373_s28 = sld [smem:[#allocation30_spill]]  ;;  %vm1050_vm5 = vcmask 146432   ;;  %vm1146_vm6 = vcmask 56320  }
  0x3b   :  { %v232_v6 = vld [vmem:[#allocation5] sm:$0xff]  ;;  %294 = vmatpush.msra.mxu1 %v277_v2  ;;  %326 = vmatpush.msra.mxu2 %v309_v3  ;;  %v449_v8 = vld [vmem:[#allocation7 + $0xf8] sm:$0xff]  ;;  %v447_v15 = vld [vmem:[#allocation7 + $0xe8] sm:$0xff]  ;;  %s2374_s24 = sld [smem:[#allocation29_spill]] }
  0x3c   :  { %1741 = vmatmul.msk.f32.vlgmr.msra.gmra.mxu1 %vm234_vm0, %v228_v4  ;;  %1745 = vmatmul.msk.f32.vlgmr.msra.gmra.mxu2 %vm234_vm0, %v228_v4  ;;  %v495_v9 = vld [vmem:[#allocation7 + $0x178] sm:$0xff]  ;;  %v402_v10 = vld [vmem:[#allocation7 + $0x70] sm:$0xff]  ;;  %v493_v16 = vld [vmem:[#allocation7 + $0x168] sm:$0xff]  ;;  %s2375_s15 = sld [smem:[#allocation32_spill]] }
  0x3d   :  { %262 = vmatpush.msra.mxu0 %v232_v6  ;;  %404 = vmatpush.msra.mxu3 %v403_v7  ;;  %v494_v11 = vld [vmem:[#allocation7 + $0x170] sm:$0xff]  ;;  %v229_v14 = vld [vmem:[#allocation2 + $0x8] sm:$0xff]  ;;  %v400_v17 = vld [vmem:[#allocation7 + $0x60] sm:$0xff] }
  0x3e   :  { %1737 = vmatmul.msk.f32.vlgmr.msra.gmra.mxu0 %vm234_vm0, %v228_v4  ;;  %496 = vmatpush.msrb.mxu1 %v495_v9  ;;  %v448_v12 = vld [vmem:[#allocation7 + $0xf0] sm:$0xff]  ;;  %v446_v18 = vld [vmem:[#allocation7 + $0xe0] sm:$0xff]  ;;  %v399_v20 = vld [vmem:[#allocation7 + $0x58] sm:$0xff] }
  0x3f   :  { %450 = vmatpush.msrb.mxu0 %v449_v8  ;;  %405 = vmatpush.msra.mxu3 %v402_v10  ;;  %v492_v19 = vld [vmem:[#allocation7 + $0x160] sm:$0xff]  ;;  %v445_v21 = vld [vmem:[#allocation7 + $0xd8] sm:$0xff]  ;;  %v231_v24 = vld [vmem:[#allocation2 + $0x18] sm:$0xff] }
  0x40   :  { %497 = vmatpush.msrb.mxu1 %v494_v11  ;;  %v491_v22 = vld [vmem:[#allocation7 + $0x158] sm:$0xff]  ;;  %v230_v23 = vld [vmem:[#allocation2 + $0x10] sm:$0xff]  ;;  %v398_v25 = vld [vmem:[#allocation7 + $0x50] sm:$0xff] }
  0x41   :  { %451 = vmatpush.msrb.mxu0 %v448_v12  ;;  %406 = vmatpush.msra.mxu3 %v401_v13  ;;  %v444_v26 = vld [vmem:[#allocation7 + $0xd0] sm:$0xff]  ;;  %v397_v28 = vld [vmem:[#allocation7 + $0x48] sm:$0xff]  ;;  %v396_v31 = vld [vmem:[#allocation7 + $0x40] sm:$0xff] }
  0x42   :  { %498 = vmatpush.msrb.mxu1 %v493_v16  ;;  %v490_v27 = vld [vmem:[#allocation7 + $0x150] sm:$0xff]  ;;  %v443_v29 = vld [vmem:[#allocation7 + $0xc8] sm:$0xff]  ;;  %v442_v32 = vld [vmem:[#allocation7 + $0xc0] sm:$0xff]  ;;  %s1722_s1 = sshll.u32 %s2375_s15, 4  ;;  %s1723_s1 = int_to_ptr.hbm [resolvable:$true] %s1722_s1 }
  0x43   :  { %452 = vmatpush.msrb.mxu0 %v447_v15  ;;  %407 = vmatpush.msra.mxu3 %v400_v17  ;;  %v489_v30 = vld [vmem:[#allocation7 + $0x148] sm:$0xff]  ;;  %v488_v33 = vld [vmem:[#allocation7 + $0x140] sm:$0xff]  ;;  %v395_v34 = vld [vmem:[#allocation7 + $0x38] sm:$0xff] }
  0x44   :  { %1742 = vmatmul.msk.f32.gmra.mxu1 %vm234_vm0, %v229_v14  ;;  %1746 = vmatmul.msk.f32.gmra.mxu2 %vm234_vm0, %v229_v14  ;;  %v441_v35 = vld [vmem:[#allocation7 + $0xb8] sm:$0xff]  ;;  %v394_v37 = vld [vmem:[#allocation7 + $0x30] sm:$0xff]  ;;  %v393_v40 = vld [vmem:[#allocation7 + $0x28] sm:$0xff] }
  0x45   :  { %453 = vmatpush.msrb.mxu0 %v446_v18  ;;  %499 = vmatpush.msrb.mxu1 %v492_v19  ;;  %v487_v36 = vld [vmem:[#allocation7 + $0x138] sm:$0xff]  ;;  %v440_v38 = vld [vmem:[#allocation7 + $0xb0] sm:$0xff]  ;;  %v439_v41 = vld [vmem:[#allocation7 + $0xa8] sm:$0xff] }
  0x46   :  { %1738 = vmatmul.msk.f32.gmra.mxu0 %vm234_vm0, %v229_v14  ;;  %408 = vmatpush.msra.mxu3 %v399_v20  ;;  %v486_v39 = vld [vmem:[#allocation7 + $0x130] sm:$0xff]  ;;  %v485_v42 = vld [vmem:[#allocation7 + $0x128] sm:$0xff]  ;;  %v392_v43 = vld [vmem:[#allocation7 + $0x20] sm:$0xff] }
  0x47   :  { %454 = vmatpush.msrb.mxu0 %v445_v21  ;;  %500 = vmatpush.msrb.mxu1 %v491_v22  ;;  %v438_v44 = vld [vmem:[#allocation7 + $0xa0] sm:$0xff]  ;;  %v391_v46 = vld [vmem:[#allocation7 + $0x18] sm:$0xff]  ;;  %v390_v49 = vld [vmem:[#allocation7 + $0x10] sm:$0xff] }
  0x48   :  { %409 = vmatpush.msra.mxu3 %v398_v25  ;;  %v484_v45 = vld [vmem:[#allocation7 + $0x120] sm:$0xff]  ;;  %v437_v47 = vld [vmem:[#allocation7 + $0x98] sm:$0xff]  ;;  %v436_v50 = vld [vmem:[#allocation7 + $0x90] sm:$0xff] }
  0x49   :  { %455 = vmatpush.msrb.mxu0 %v444_v26  ;;  %501 = vmatpush.msrb.mxu1 %v490_v27  ;;  %v483_v48 = vld [vmem:[#allocation7 + $0x118] sm:$0xff]  ;;  %v482_v51 = vld [vmem:[#allocation7 + $0x110] sm:$0xff]  ;;  %v389_v52 = vld [vmem:[#allocation7 + $0x8] sm:$0xff] }
  0x4a   :  { %410 = vmatpush.msra.mxu3 %v397_v28  ;;  %v435_v53 = vld [vmem:[#allocation7 + $0x88] sm:$0xff]  ;;  %v388_v55 = vld [vmem:[#allocation7] sm:$0xff]  ;;  %v2272_v3 = vld [vmem:[%s2347_s4] ss:$0 sm:$0xff] }
  0x4b   :  { %456 = vmatpush.msrb.mxu0 %v443_v29  ;;  %502 = vmatpush.msrb.mxu1 %v489_v30  ;;  %v481_v54 = vld [vmem:[#allocation7 + $0x108] sm:$0xff]  ;;  %v434_v56 = vld [vmem:[#allocation7 + $0x80] sm:$0xff]  ;;  %v598_v6 = vld [vmem:[#allocation8 + $0x78] sm:$0xff] }
  0x4c   :  { %1743 = vmatmul.msk.f32.gmra.mxu1 %vm234_vm0, %v230_v23  ;;  %1747 = vmatmul.msk.f32.gmra.mxu2 %vm234_vm0, %v230_v23  ;;  %v480_v57 = vld [vmem:[#allocation7 + $0x100] sm:$0xff]  ;;  %v644_v7 = vld [vmem:[#allocation8 + $0xf8] sm:$0xff]  ;;  %v597_v11 = vld [vmem:[#allocation8 + $0x70] sm:$0xff] }
  0x4d   :  { %411 = vmatpush.msra.mxu3 %v396_v31  ;;  %457 = vmatpush.msrb.mxu0 %v442_v32  ;;  %v690_v8 = vld [vmem:[#allocation8 + $0x178] sm:$0xff]  ;;  %v643_v12 = vld [vmem:[#allocation8 + $0xf0] sm:$0xff]  ;;  %v596_v16 = vld [vmem:[#allocation8 + $0x68] sm:$0xff] }
  0x4e   :  { %1739 = vmatmul.msk.f32.gmra.mxu0 %vm234_vm0, %v230_v23  ;;  %503 = vmatpush.msrb.mxu1 %v488_v33  ;;  %v689_v13 = vld [vmem:[#allocation8 + $0x170] sm:$0xff]  ;;  %v642_v17 = vld [vmem:[#allocation8 + $0xe8] sm:$0xff]  ;;  %v595_v21 = vld [vmem:[#allocation8 + $0x60] sm:$0xff] }
  0x4f   :  { %412 = vmatpush.msra.mxu3 %v395_v34  ;;  %458 = vmatpush.msrb.mxu0 %v441_v35  ;;  %v688_v19 = vld [vmem:[#allocation8 + $0x168] sm:$0xff]  ;;  %v641_v23 = vld [vmem:[#allocation8 + $0xe0] sm:$0xff]  ;;  %v594_v26 = vld [vmem:[#allocation8 + $0x58] sm:$0xff] }
  0x50   :  { %504 = vmatpush.msrb.mxu1 %v487_v36  ;;  %599 = vmatpush.msrb.mxu2 %v598_v6  ;;  %v640_v29 = vld [vmem:[#allocation8 + $0xd8] sm:$0xff] }
  0x51   :  { %413 = vmatpush.msra.mxu3 %v394_v37  ;;  %459 = vmatpush.msrb.mxu0 %v440_v38  ;;  %v686_v30 = vld [vmem:[#allocation8 + $0x158] sm:$0xff] }
  0x52   :  { %505 = vmatpush.msrb.mxu1 %v486_v39  ;;  %600 = vmatpush.msrb.mxu2 %v597_v11  ;;  %v632_v6 = vld [vmem:[#allocation8 + $0x98] sm:$0xff]  ;;  %v584_v11 = vld [vmem:[#allocation8 + $0x8] sm:$0xff] }
  0x53   :  { %414 = vmatpush.msra.mxu3 %v393_v40  ;;  %460 = vmatpush.msrb.mxu0 %v439_v41 }
  0x54   :  { %1744 = vmatmul.msk.f32.gmra.mxu1 %vm234_vm0, %v231_v24  ;;  %1748 = vmatmul.msk.f32.gmra.mxu2 %vm234_vm0, %v231_v24 }
  0x55   :  { %506 = vmatpush.msrb.mxu1 %v485_v42  ;;  %415 = vmatpush.msra.mxu3 %v392_v43 }
  0x56   :  { %1740 = vmatmul.msk.f32.gmra.mxu0 %vm234_vm0, %v231_v24  ;;  %601 = vmatpush.msrb.mxu2 %v596_v16  ;;  %v687_v24 = vld [vmem:[#allocation8 + $0x160] sm:$0xff] }
  0x57   :  { %461 = vmatpush.msrb.mxu0 %v438_v44  ;;  %507 = vmatpush.msrb.mxu1 %v484_v45  ;;  %v675_v16 = vld [vmem:[#allocation8 + $0x100] sm:$0xff] }
  0x58   :  { %416 = vmatpush.msra.mxu3 %v391_v46  ;;  %602 = vmatpush.msrb.mxu2 %v595_v21 }
  0x59   :  { %462 = vmatpush.msrb.mxu0 %v437_v47  ;;  %508 = vmatpush.msrb.mxu1 %v483_v48  ;;  %v593_v48 = vld [vmem:[#allocation8 + $0x50] sm:$0xff] }
  0x5a   :  { %417 = vmatpush.msra.mxu3 %v390_v49  ;;  %603 = vmatpush.msrb.mxu2 %v594_v26  ;;  %v639_v49 = vld [vmem:[#allocation8 + $0xd0] sm:$0xff] }
  0x5b   :  { %463 = vmatpush.msrb.mxu0 %v436_v50  ;;  %509 = vmatpush.msrb.mxu1 %v482_v51  ;;  %v685_v50 = vld [vmem:[#allocation8 + $0x150] sm:$0xff]  ;;  %v592_v51 = vld [vmem:[#allocation8 + $0x48] sm:$0xff] }
  0x5c   :  { %418 = vmatpush.msra.mxu3 %v389_v52  ;;  %604 = vmatpush.msrb.mxu2 %v593_v48  ;;  %v638_v52 = vld [vmem:[#allocation8 + $0xc8] sm:$0xff] }
  0x5d   :  { %464 = vmatpush.msrb.mxu0 %v435_v53  ;;  %510 = vmatpush.msrb.mxu1 %v481_v54  ;;  %v684_v53 = vld [vmem:[#allocation8 + $0x148] sm:$0xff]  ;;  %v591_v54 = vld [vmem:[#allocation8 + $0x40] sm:$0xff] }
  0x5e   :  { %419 = vmatpush.msra.mxu3 %v388_v55  ;;  %v637_v55 = vld [vmem:[#allocation8 + $0xc0] sm:$0xff]  ;;  %605 = vmatpush.msrb.mxu2 %v592_v51 }
  0x5f   :  { %465 = vmatpush.msrb.mxu0 %v434_v56  ;;  %511 = vmatpush.msrb.mxu1 %v480_v57  ;;  %v683_v56 = vld [vmem:[#allocation8 + $0x140] sm:$0xff]  ;;  %v590_v57 = vld [vmem:[#allocation8 + $0x38] sm:$0xff] }
  0x60   :  { %645 = vmatpush.msrb.mxu3 %v644_v7  ;;  %606 = vmatpush.msrb.mxu2 %v591_v54  ;;  %v678_v7 = vld [vmem:[#allocation8 + $0x118] sm:$0xff] }
  0x61   :  { %691 = vmatpush.msra.mxu0 %v690_v8  ;;  %v585_v8 = vld [vmem:[#allocation8 + $0x10] sm:$0xff] }
  0x62   :  { %646 = vmatpush.msrb.mxu3 %v643_v12  ;;  %607 = vmatpush.msrb.mxu2 %v590_v57  ;;  %v630_v12 = vld [vmem:[#allocation8 + $0x88] sm:$0xff] }
  0x63   :  { %692 = vmatpush.msra.mxu0 %v689_v13  ;;  %v676_v13 = vld [vmem:[#allocation8 + $0x108] sm:$0xff] }
  0x64   :  { %647 = vmatpush.msrb.mxu3 %v642_v17 }
  0x65   :  { %693 = vmatpush.msra.mxu0 %v688_v19 }
  0x66   :  { %648 = vmatpush.msrb.mxu3 %v641_v23 }
  0x67   :  { %694 = vmatpush.msra.mxu0 %v687_v24 }
  0x68   :  { %649 = vmatpush.msrb.mxu3 %v640_v29 }
  0x69   :  { %695 = vmatpush.msra.mxu0 %v686_v30 }
  0x6a   :  { %650 = vmatpush.msrb.mxu3 %v639_v49 }
  0x6b   :  { %696 = vmatpush.msra.mxu0 %v685_v50 }
  0x6c   :  { %651 = vmatpush.msrb.mxu3 %v638_v52 }
  0x6d   :  { %697 = vmatpush.msra.mxu0 %v684_v53 }
  0x6e   :  { %652 = vmatpush.msrb.mxu3 %v637_v55 }
  0x6f   :  { %698 = vmatpush.msra.mxu0 %v683_v56 }
  0xb9   :  { %v296_v58 = vpop.f32.mrf.mxu1 }
  0xba   :  { %v345_v63 = vrot.slane %v296_v58, 1  ;;  %v636_v58 = vld [vmem:[#allocation8 + $0xb8] sm:$0xff] }
  0xbb   :  { %v264_v59 = vpop.f32.mrf.mxu0  ;;  %653 = vmatpush.msrb.mxu3 %v636_v58 }
  0xbf   :  { %v328_v60 = vpop.f32.mrf.mxu2 }
  0xc0   :  { %v365_v4 = vrot.slane %v328_v60, 2  ;;  %v589_v60 = vld [vmem:[#allocation8 + $0x30] sm:$0xff] }
  0xc1   :  { %v299_v61 = vpop.f32.mrf.mxu1  ;;  %608 = vmatpush.msrb.mxu2 %v589_v60 }
  0xc2   :  { %v346_v62 = vrot.slane %v299_v61, 1  ;;  %v635_v61 = vld [vmem:[#allocation8 + $0xb0] sm:$0xff] }
  0xc3   :  { %v267_v1 = vpop.f32.mrf.mxu0  ;;  %654 = vmatpush.msrb.mxu3 %v635_v61 }
  0xc4   :  { %v347_v0 = vsel %vm344_vm1, %v345_v63, %v346_v62  ;;  %v588_v63 = vld [vmem:[#allocation8 + $0x28] sm:$0xff] }
  0xc5   :  { %v356_v9 = vadd.f32 %v347_v0, %v264_v59  ;;  %v682_v59 = vld [vmem:[#allocation8 + $0x138] sm:$0xff]  ;;  %v634_v0 = vld [vmem:[#allocation8 + $0xa8] sm:$0xff]  ;;  %609 = vmatpush.msrb.mxu2 %v588_v63 }
  0xc6   :  { %699 = vmatpush.msra.mxu0 %v682_v59  ;;  %655 = vmatpush.msrb.mxu3 %v634_v0 }
  0xc7   :  { %v331_v2 = vpop.f32.mrf.mxu2 }
  0xc8   :  { %v366_v5 = vrot.slane %v331_v2, 2  ;;  %v587_v2 = vld [vmem:[#allocation8 + $0x20] sm:$0xff] }
  0xc9   :  { %v302_v10 = vpop.f32.mrf.mxu1  ;;  %610 = vmatpush.msrb.mxu2 %v587_v2 }
  0xca   :  { %v367_v14 = vsel %vm364_vm2, %v365_v4, %v366_v5  ;;  %v348_v15 = vrot.slane %v302_v10, 1  ;;  %v679_v4 = vld [vmem:[#allocation8 + $0x120] sm:$0xff]  ;;  %v677_v10 = vld [vmem:[#allocation8 + $0x110] sm:$0xff] }
  0xcb   :  { %v376_v18 = vadd.f32 %v367_v14, %v356_v9  ;;  %v270_v27 = vpop.f32.mrf.mxu0  ;;  %v631_v9 = vld [vmem:[#allocation8 + $0x90] sm:$0xff]  ;;  %v583_v14 = vld [vmem:[#allocation8] sm:$0xff] }
  0xcc   :  { %v349_v22 = vsel %vm344_vm1, %v346_v62, %v348_v15  ;;  %v681_v62 = vld [vmem:[#allocation8 + $0x130] sm:$0xff] }
  0xcd   :  { %v384_v20 = vadd.f32 %v2272_v3, %v376_v18  ;;  %v357_v31 = vadd.f32 %v349_v22, %v267_v1  ;;  %700 = vmatpush.msra.mxu0 %v681_v62  ;;  %v680_v1 = vld [vmem:[#allocation8 + $0x128] sm:$0xff] }
  0xcf   :  { %v334_v25 = vpop.f32.mrf.mxu2  ;;  %420 = vmatmul.f32.vlgmr.msra.gmra.mxu3 %v384_v20  ;;  %466 = vmatmul.f32.vlgmr.msrb.gmra.mxu0 %v384_v20 }
  0xd0   :  { %v368_v28 = vrot.slane %v334_v25, 2  ;;  %512 = vmatmul.f32.vlgmr.msrb.gmra.mxu1 %v384_v20  ;;  %701 = vmatpush.msra.mxu0 %v680_v1 }
  0xd1   :  { %v305_v32 = vpop.f32.mrf.mxu1 }
  0xd2   :  { %v369_v33 = vsel %vm364_vm2, %v366_v5, %v368_v28  ;;  %v350_v34 = vrot.slane %v305_v32, 1  ;;  %702 = vmatpush.msra.mxu0 %v679_v4  ;;  %v586_v5 = vld [vmem:[#allocation8 + $0x18] sm:$0xff]  ;;  %v1779_v32 = vld [vmem:[%s2350_s7] ss:$0 sm:$0xff] }
  0xd3   :  { %v377_v35 = vadd.f32 %v369_v33, %v357_v31  ;;  %v273_v41 = vpop.f32.mrf.mxu0  ;;  %611 = vmatpush.msrb.mxu2 %v586_v5  ;;  %v1778_v31 = vld [vmem:[%s2349_s6] ss:$0 sm:$0xff]  ;;  %v793_v33 = vld [vmem:[#allocation10 + $0x78] sm:$0xff] }
  0xd4   :  { %v351_v37 = vsel %vm344_vm1, %v348_v15, %v350_v34  ;;  %v359_v44 = vadd.f32 %v350_v34, %v273_v41  ;;  %703 = vmatpush.msra.mxu0 %v678_v7  ;;  %v629_v15 = vld [vmem:[#allocation8 + $0x80] sm:$0xff]  ;;  %v838_v34 = vld [vmem:[#allocation10 + $0xf8] sm:$0xff]  ;;  %794 = vmatpush.msra.mxu1 %v793_v33 }
  0xd5   :  { %v385_v36 = vadd.f32 %v2272_v3, %v377_v35  ;;  %v358_v40 = vadd.f32 %v351_v37, %v270_v27  ;;  %612 = vmatpush.msrb.mxu2 %v585_v8  ;;  %v883_v35 = vld [vmem:[#allocation10 + $0x178] sm:$0xff] }
  0xd6   :  { %704 = vmatpush.msra.mxu0 %v677_v10  ;;  %v836_v10 = vld [vmem:[#allocation10 + $0xe8] sm:$0xff]  ;;  %v785_v33 = vld [vmem:[#allocation10 + $0x38] sm:$0xff] }
  0xd7   :  { %v337_v38 = vpop.f32.mrf.mxu2  ;;  %423 = vmatmul.f32.gmra.mxu3 %v385_v36  ;;  %469 = vmatmul.f32.gmra.mxu0 %v385_v36 }
  0xd8   :  { %v370_v39 = vrot.slane %v337_v38, 2  ;;  %515 = vmatmul.f32.gmra.mxu1 %v385_v36  ;;  %613 = vmatpush.msrb.mxu2 %v584_v11  ;;  %v928_v38 = vld [vmem:[#allocation10 + $0x1f8] sm:$0xff]  ;;  %v881_v11 = vld [vmem:[#allocation10 + $0x168] sm:$0xff] }
  0xd9   :  { %705 = vmatpush.msra.mxu0 %v676_v13  ;;  %v790_v13 = vld [vmem:[#allocation10 + $0x60] sm:$0xff] }
  0xda   :  { %v371_v42 = vsel %vm364_vm2, %v368_v28, %v370_v39  ;;  %v379_v46 = vadd.f32 %v370_v39, %v359_v44  ;;  %614 = vmatpush.msrb.mxu2 %v583_v14  ;;  %v792_v39 = vld [vmem:[#allocation10 + $0x70] sm:$0xff]  ;;  %v835_v14 = vld [vmem:[#allocation10 + $0xe0] sm:$0xff] }
  0xdb   :  { %v378_v43 = vadd.f32 %v371_v42, %v358_v40  ;;  %706 = vmatpush.msra.mxu0 %v675_v16  ;;  %v837_v40 = vld [vmem:[#allocation10 + $0xf0] sm:$0xff]  ;;  %795 = vmatpush.msra.mxu1 %v792_v39  ;;  %v925_v16 = vld [vmem:[#allocation10 + $0x1e0] sm:$0xff] }
  0xdc   :  { %v387_v47 = vadd.f32 %v2272_v3, %v379_v46  ;;  %839 = vmatpush.msra.mxu2 %v838_v34  ;;  %v927_v44 = vld [vmem:[#allocation10 + $0x1f0] sm:$0xff]  ;;  %v830_v34 = vld [vmem:[#allocation10 + $0xb8] sm:$0xff] }
  0xdd   :  { %v386_v45 = vadd.f32 %v2272_v3, %v378_v43  ;;  %v633_v3 = vld [vmem:[#allocation8 + $0xa0] sm:$0xff]  ;;  %929 = vmatpush.msrb.mxu0 %v928_v38  ;;  %v882_v43 = vld [vmem:[#allocation10 + $0x170] sm:$0xff] }
  0xde   :  { %656 = vmatpush.msrb.mxu3 %v633_v3  ;;  %840 = vmatpush.msra.mxu2 %v837_v40  ;;  %v829_v38 = vld [vmem:[#allocation10 + $0xb0] sm:$0xff] }
  0xdf   :  { %426 = vmatmul.f32.gmra.mxu3 %v386_v45  ;;  %472 = vmatmul.f32.gmra.mxu0 %v386_v45  ;;  %v874_v39 = vld [vmem:[#allocation10 + $0x130] sm:$0xff] }
  0xe0   :  { %518 = vmatmul.f32.gmra.mxu1 %v386_v45  ;;  %657 = vmatpush.msrb.mxu3 %v632_v6  ;;  %v919_v40 = vld [vmem:[#allocation10 + $0x1b0] sm:$0xff] }
  0xe1   :  { %930 = vmatpush.msrb.mxu0 %v927_v44  ;;  %841 = vmatpush.msra.mxu2 %v836_v10  ;;  %v918_v44 = vld [vmem:[#allocation10 + $0x1a8] sm:$0xff] }
  0xe2   :  { %658 = vmatpush.msrb.mxu3 %v631_v9  ;;  %v791_v9 = vld [vmem:[#allocation10 + $0x68] sm:$0xff] }
  0xe3   :  { %796 = vmatpush.msra.mxu1 %v791_v9  ;;  %842 = vmatpush.msra.mxu2 %v835_v14  ;;  %v968_v9 = vld [vmem:[#allocation10 + $0x250] sm:$0xff] }
  0xe4   :  { %659 = vmatpush.msrb.mxu3 %v630_v12  ;;  %v926_v12 = vld [vmem:[#allocation10 + $0x1e8] sm:$0xff]  ;;  %v964_v14 = vld [vmem:[#allocation10 + $0x230] sm:$0xff] }
  0xe5   :  { %931 = vmatpush.msrb.mxu0 %v926_v12  ;;  %797 = vmatpush.msra.mxu1 %v790_v13  ;;  %v966_v12 = vld [vmem:[#allocation10 + $0x240] sm:$0xff]  ;;  %v965_v13 = vld [vmem:[#allocation10 + $0x238] sm:$0xff] }
  0xe6   :  { %660 = vmatpush.msrb.mxu3 %v629_v15  ;;  %v880_v15 = vld [vmem:[#allocation10 + $0x160] sm:$0xff] }
  0xe7   :  { %429 = vmatmul.f32.gmra.mxu3 %v387_v47  ;;  %475 = vmatmul.f32.gmra.mxu0 %v387_v47 }
  0xe8   :  { %521 = vmatmul.f32.gmra.mxu1 %v387_v47  ;;  %884 = vmatpush.msra.mxu3 %v883_v35  ;;  %v875_v35 = vld [vmem:[#allocation10 + $0x138] sm:$0xff] }
  0xe9   :  { %932 = vmatpush.msrb.mxu0 %v925_v16 }
  0xea   :  { %885 = vmatpush.msra.mxu3 %v882_v43  ;;  %v873_v43 = vld [vmem:[#allocation10 + $0x128] sm:$0xff] }
  0xec   :  { %886 = vmatpush.msra.mxu3 %v881_v11  ;;  %v967_v11 = vld [vmem:[#allocation10 + $0x248] sm:$0xff] }
  0xee   :  { %887 = vmatpush.msra.mxu3 %v880_v15 }
 0x14c   :  { %v467_v17 = vpop.f32.mrf.mxu0 }
 0x14d   :  { %v513_v18 = vpop.f32.mrf.mxu1  ;;  %v529_v21 = vrot.slane %v467_v17, 1  ;;  %v789_v17 = vld [vmem:[#allocation10 + $0x58] sm:$0xff] }
 0x14e   :  { %v548_v25 = vrot.slane %v513_v18, 2  ;;  %v834_v18 = vld [vmem:[#allocation10 + $0xd8] sm:$0xff]  ;;  %798 = vmatpush.msra.mxu1 %v789_v17 }
 0x14f   :  { %843 = vmatpush.msra.mxu2 %v834_v18 }
 0x152   :  { %v421_v19 = vpop.f32.mrf.mxu3 }
 0x154   :  { %v470_v20 = vpop.f32.mrf.mxu0 }
 0x155   :  { %v530_v22 = vrot.slane %v470_v20, 1  ;;  %v516_v23 = vpop.f32.mrf.mxu1  ;;  %v924_v20 = vld [vmem:[#allocation10 + $0x1d8] sm:$0xff] }
 0x156   :  { %v549_v24 = vrot.slane %v516_v23, 2  ;;  %933 = vmatpush.msrb.mxu0 %v924_v20  ;;  %v878_v23 = vld [vmem:[#allocation10 + $0x150] sm:$0xff]  ;;  %v963_v20 = vld [vmem:[#allocation10 + $0x228] sm:$0xff] }
 0x157   :  { %v531_v26 = vsel %vm344_vm1, %v529_v21, %v530_v22  ;;  %v788_v21 = vld [vmem:[#allocation10 + $0x50] sm:$0xff] }
 0x158   :  { %v540_v27 = vadd.f32 %v531_v26, %v421_v19  ;;  %v550_v28 = vsel %vm364_vm2, %v548_v25, %v549_v24  ;;  %v879_v19 = vld [vmem:[#allocation10 + $0x158] sm:$0xff]  ;;  %799 = vmatpush.msra.mxu1 %v788_v21  ;;  %v787_v25 = vld [vmem:[#allocation10 + $0x48] sm:$0xff] }
 0x159   :  { %888 = vmatpush.msra.mxu3 %v879_v19  ;;  %v832_v26 = vld [vmem:[#allocation10 + $0xc8] sm:$0xff] }
 0x15a   :  { %v559_v29 = vadd.f32 %v550_v28, %v540_v27  ;;  %v424_v30 = vpop.f32.mrf.mxu3  ;;  %v877_v27 = vld [vmem:[#allocation10 + $0x148] sm:$0xff]  ;;  %800 = vmatpush.msra.mxu1 %v787_v25 }
 0x15b   :  { %889 = vmatpush.msra.mxu3 %v878_v23  ;;  %v922_v28 = vld [vmem:[#allocation10 + $0x1c8] sm:$0xff]  ;;  %v962_v23 = vld [vmem:[#allocation10 + $0x220] sm:$0xff] }
 0x15c   :  { %v563_v36 = vmax.f32 %v559_v29, 0.0  ;;  %v473_v37 = vpop.f32.mrf.mxu0  ;;  %v786_v29 = vld [vmem:[#allocation10 + $0x40] sm:$0xff] }
 0x15d   :  { %v532_v41 = vrot.slane %v473_v37, 1  ;;  %v519_v42 = vpop.f32.mrf.mxu1  ;;  %890 = vmatpush.msra.mxu3 %v877_v27  ;;  %801 = vmatpush.msra.mxu1 %v786_v29  ;;  %v784_v37 = vld [vmem:[#allocation10 + $0x30] sm:$0xff]  ;;  %v961_v29 = vld [vmem:[#allocation10 + $0x218] sm:$0xff] }
 0x15e   :  { %v551_v45 = vrot.slane %v519_v42, 2  ;;  %v571_v46 = vmul.f32 %v1778_v31, %v563_v36  ;;  %v920_v36 = vld [vmem:[#allocation10 + $0x1b8] sm:$0xff]  ;;  %v828_v42 = vld [vmem:[#allocation10 + $0xa8] sm:$0xff] }
 0x15f   :  { %v533_v47 = vsel %vm344_vm1, %v530_v22, %v532_v41  ;;  %v833_v22 = vld [vmem:[#allocation10 + $0xd0] sm:$0xff]  ;;  %802 = vmatpush.msra.mxu1 %v785_v33 }
 0x160   :  { %v541_v48 = vadd.f32 %v533_v47, %v424_v30  ;;  %v579_v49 = vadd.f32 %v1779_v32, %v571_v46  ;;  %v552_v50 = vsel %vm364_vm2, %v549_v24, %v551_v45  ;;  %844 = vmatpush.msra.mxu2 %v833_v22  ;;  %v923_v24 = vld [vmem:[#allocation10 + $0x1d0] sm:$0xff]  ;;  %v831_v30 = vld [vmem:[#allocation10 + $0xc0] sm:$0xff] }
 0x161   :  { %934 = vmatpush.msrb.mxu0 %v923_v24  ;;  %803 = vmatpush.msra.mxu1 %v784_v37  ;;  %v827_v46 = vld [vmem:[#allocation10 + $0xa0] sm:$0xff]  ;;  %v1781_v33 = vld [vmem:[%s2353_s10] ss:$0 sm:$0xff]  ;;  %v959_v37 = vld [vmem:[#allocation10 + $0x208] sm:$0xff] }
 0x162   :  { %v560_v51 = vadd.f32 %v552_v50, %v541_v48  ;;  %v427_v52 = vpop.f32.mrf.mxu3  ;;  %615 = vmatmul.f32.vlgmr.msrb.gmra.mxu2 %v579_v49  ;;  %661 = vmatmul.f32.vlgmr.msrb.gmra.mxu3 %v579_v49  ;;  %v872_v47 = vld [vmem:[#allocation10 + $0x120] sm:$0xff]  ;;  %v826_v50 = vld [vmem:[#allocation10 + $0x98] sm:$0xff] }
 0x163   :  { %707 = vmatmul.f32.vlgmr.msra.gmra.mxu0 %v579_v49  ;;  %845 = vmatpush.msra.mxu2 %v832_v26  ;;  %v917_v48 = vld [vmem:[#allocation10 + $0x1a0] sm:$0xff]  ;;  %v781_v49 = vld [vmem:[#allocation10 + $0x18] sm:$0xff] }
 0x164   :  { %v564_v53 = vmax.f32 %v560_v51, 0.0  ;;  %v476_v54 = vpop.f32.mrf.mxu0  ;;  %935 = vmatpush.msrb.mxu0 %v922_v28  ;;  %v871_v51 = vld [vmem:[#allocation10 + $0x118] sm:$0xff]  ;;  %v1780_v28 = vld [vmem:[%s2352_s9] ss:$0 sm:$0xff] }
 0x165   :  { %v534_v55 = vrot.slane %v476_v54, 1  ;;  %v522_v56 = vpop.f32.mrf.mxu1  ;;  %846 = vmatpush.msra.mxu2 %v831_v30  ;;  %v825_v54 = vld [vmem:[#allocation10 + $0x90] sm:$0xff] }
 0x166   :  { %v553_v57 = vrot.slane %v522_v56, 2  ;;  %v572_v58 = vmul.f32 %v1778_v31, %v564_v53  ;;  %v780_v53 = vld [vmem:[#allocation10 + $0x10] sm:$0xff] }
 0x167   :  { %v535_v59 = vsel %vm344_vm1, %v532_v41, %v534_v55  ;;  %847 = vmatpush.msra.mxu2 %v830_v34  ;;  %v783_v41 = vld [vmem:[#allocation10 + $0x28] sm:$0xff]  ;;  %v915_v56 = vld [vmem:[#allocation10 + $0x190] sm:$0xff] }
 0x168   :  { %v542_v60 = vadd.f32 %v535_v59, %v427_v52  ;;  %v580_v61 = vadd.f32 %v1779_v32, %v572_v58  ;;  %v554_v62 = vsel %vm364_vm2, %v551_v45, %v553_v57  ;;  %804 = vmatpush.msra.mxu1 %v783_v41  ;;  %v782_v45 = vld [vmem:[#allocation10 + $0x20] sm:$0xff]  ;;  %v916_v52 = vld [vmem:[#allocation10 + $0x198] sm:$0xff]  ;;  %v824_v58 = vld [vmem:[#allocation10 + $0x88] sm:$0xff] }
 0x169   :  { %848 = vmatpush.msra.mxu2 %v829_v38  ;;  %v869_v59 = vld [vmem:[#allocation10 + $0x108] sm:$0xff]  ;;  %v960_v30 = vld [vmem:[#allocation10 + $0x210] sm:$0xff] }
 0x16a   :  { %v561_v63 = vadd.f32 %v554_v62, %v542_v60  ;;  %v430_v0 = vpop.f32.mrf.mxu3  ;;  %618 = vmatmul.f32.gmra.mxu2 %v580_v61  ;;  %664 = vmatmul.f32.gmra.mxu3 %v580_v61  ;;  %v914_v60 = vld [vmem:[#allocation10 + $0x188] sm:$0xff]  ;;  %v823_v62 = vld [vmem:[#allocation10 + $0x80] sm:$0xff] }
 0x16b   :  { %v543_v1 = vadd.f32 %v534_v55, %v430_v0  ;;  %710 = vmatmul.f32.gmra.mxu0 %v580_v61  ;;  %849 = vmatpush.msra.mxu2 %v828_v42  ;;  %v870_v55 = vld [vmem:[#allocation10 + $0x110] sm:$0xff]  ;;  %v778_v61 = vld [vmem:[#allocation10] sm:$0xff] }
 0x16c   :  { %v565_v2 = vmax.f32 %v561_v63, 0.0  ;;  %805 = vmatpush.msra.mxu1 %v782_v45  ;;  %v868_v63 = vld [vmem:[#allocation10 + $0x100] sm:$0xff] }
 0x16d   :  { %v562_v3 = vadd.f32 %v553_v57, %v543_v1  ;;  %850 = vmatpush.msra.mxu2 %v827_v46  ;;  %v779_v57 = vld [vmem:[#allocation10 + $0x8] sm:$0xff]  ;;  %v913_v0 = vld [vmem:[#allocation10 + $0x180] sm:$0xff]  ;;  %v973_v1 = vld [vmem:[#allocation10 + $0x278] sm:$0xff] }
 0x16e   :  { %v573_v4 = vmul.f32 %v1778_v31, %v565_v2  ;;  %806 = vmatpush.msra.mxu1 %v781_v49  ;;  %v972_v2 = vld [vmem:[#allocation10 + $0x270] sm:$0xff] }
 0x16f   :  { %v566_v5 = vmax.f32 %v562_v3, 0.0  ;;  %851 = vmatpush.msra.mxu2 %v826_v50 }
 0x170   :  { %v581_v6 = vadd.f32 %v1779_v32, %v573_v4  ;;  %807 = vmatpush.msra.mxu1 %v780_v53  ;;  %v971_v4 = vld [vmem:[#allocation10 + $0x268] sm:$0xff] }
 0x171   :  { %v574_v7 = vmul.f32 %v1778_v31, %v566_v5  ;;  %v876_v31 = vld [vmem:[#allocation10 + $0x140] sm:$0xff]  ;;  %852 = vmatpush.msra.mxu2 %v825_v54 }
 0x172   :  { %621 = vmatmul.f32.gmra.mxu2 %v581_v6  ;;  %667 = vmatmul.f32.gmra.mxu3 %v581_v6  ;;  %v970_v5 = vld [vmem:[#allocation10 + $0x260] sm:$0xff] }
 0x173   :  { %713 = vmatmul.f32.gmra.mxu0 %v581_v6  ;;  %v582_v8 = vadd.f32 %v1779_v32, %v574_v7  ;;  %v921_v32 = vld [vmem:[#allocation10 + $0x1c0] sm:$0xff]  ;;  %891 = vmatpush.msra.mxu3 %v876_v31  ;;  %v969_v6 = vld [vmem:[#allocation10 + $0x258] sm:$0xff] }
 0x174   :  { %936 = vmatpush.msrb.mxu0 %v921_v32  ;;  %808 = vmatpush.msra.mxu1 %v779_v57 }
 0x175   :  { %892 = vmatpush.msra.mxu3 %v875_v35  ;;  %853 = vmatpush.msra.mxu2 %v824_v58 }
 0x176   :  { %937 = vmatpush.msrb.mxu0 %v920_v36  ;;  %809 = vmatpush.msra.mxu1 %v778_v61 }
 0x177   :  { %893 = vmatpush.msra.mxu3 %v874_v39  ;;  %854 = vmatpush.msra.mxu2 %v823_v62 }
 0x178   :  { %938 = vmatpush.msrb.mxu0 %v919_v40  ;;  %974 = vmatpush.msrb.mxu1 %v973_v1 }
 0x179   :  { %894 = vmatpush.msra.mxu3 %v873_v43  ;;  %v958_v43 = vld [vmem:[#allocation10 + $0x200] sm:$0xff] }
 0x17a   :  { %624 = vmatmul.f32.gmra.mxu2 %v582_v8  ;;  %670 = vmatmul.f32.gmra.mxu3 %v582_v8 }
 0x17b   :  { %716 = vmatmul.f32.gmra.mxu0 %v582_v8  ;;  %895 = vmatpush.msra.mxu3 %v872_v47 }
 0x17c   :  { %939 = vmatpush.msrb.mxu0 %v918_v44  ;;  %975 = vmatpush.msrb.mxu1 %v972_v2 }
 0x17d   :  { %896 = vmatpush.msra.mxu3 %v871_v51 }
 0x17e   :  { %940 = vmatpush.msrb.mxu0 %v917_v48  ;;  %976 = vmatpush.msrb.mxu1 %v971_v4 }
 0x17f   :  { %897 = vmatpush.msra.mxu3 %v870_v55 }
 0x180   :  { %941 = vmatpush.msrb.mxu0 %v916_v52  ;;  %977 = vmatpush.msrb.mxu1 %v970_v5 }
 0x181   :  { %898 = vmatpush.msra.mxu3 %v869_v59 }
 0x182   :  { %942 = vmatpush.msrb.mxu0 %v915_v56  ;;  %978 = vmatpush.msrb.mxu1 %v969_v6 }
 0x183   :  { %899 = vmatpush.msra.mxu3 %v868_v63 }
 0x184   :  { %943 = vmatpush.msrb.mxu0 %v914_v60  ;;  %979 = vmatpush.msrb.mxu1 %v968_v9 }
 0x186   :  { %944 = vmatpush.msrb.mxu0 %v913_v0  ;;  %980 = vmatpush.msrb.mxu1 %v967_v11 }
 0x188   :  { %981 = vmatpush.msrb.mxu1 %v966_v12 }
 0x18a   :  { %982 = vmatpush.msrb.mxu1 %v965_v13 }
 0x18c   :  { %983 = vmatpush.msrb.mxu1 %v964_v14 }
 0x18e   :  { %984 = vmatpush.msrb.mxu1 %v963_v20 }
 0x190   :  { %985 = vmatpush.msrb.mxu1 %v962_v23 }
 0x192   :  { %986 = vmatpush.msrb.mxu1 %v961_v29 }
 0x194   :  { %987 = vmatpush.msrb.mxu1 %v960_v30  ;;  %v1145_v30 = vld [vmem:[#allocation13 + $0x18] sm:$0x7f] }
 0x195   :  { %1757 = vmatpush.msk.msrb.mxu3 %vm344_vm1, %v1145_v30  ;;  %v1092_v30 = vld [vmem:[#allocation11 + $0x78] sm:$0xff] }
 0x196   :  { %988 = vmatpush.msrb.mxu1 %v959_v37  ;;  %v1129_v37 = vld [vmem:[#allocation11 + $0x1a0] sm:$0xff] }
 0x198   :  { %989 = vmatpush.msrb.mxu1 %v958_v43  ;;  %v1136_v43 = vld [vmem:[#allocation11 + $0x1d8] sm:$0xff] }
 0x1e0   :  { %v708_v3 = vpop.f32.mrf.mxu0 }
 0x1e1   :  { %v743_v21 = vrot.slane %v708_v3, 2 }
 0x1e5   :  { %v616_v7 = vpop.f32.mrf.mxu2  ;;  %v662_v8 = vpop.f32.mrf.mxu3 }
 0x1e6   :  { %v724_v17 = vrot.slane %v662_v8, 1 }
 0x1e8   :  { %v711_v10 = vpop.f32.mrf.mxu0 }
 0x1e9   :  { %v744_v18 = vrot.slane %v711_v10, 2 }
 0x1eb   :  { %v745_v26 = vsel %vm364_vm2, %v743_v21, %v744_v18 }
 0x1ed   :  { %v619_v15 = vpop.f32.mrf.mxu2  ;;  %v665_v16 = vpop.f32.mrf.mxu3 }
 0x1ee   :  { %v725_v19 = vrot.slane %v665_v16, 1 }
 0x1f0   :  { %v726_v22 = vsel %vm344_vm1, %v724_v17, %v725_v19  ;;  %v714_v25 = vpop.f32.mrf.mxu0 }
 0x1f1   :  { %v735_v24 = vadd.f32 %v726_v22, %v616_v7  ;;  %v746_v34 = vrot.slane %v714_v25, 2 }
 0x1f3   :  { %v754_v27 = vadd.f32 %v745_v26, %v735_v24  ;;  %v747_v42 = vsel %vm364_vm2, %v744_v18, %v746_v34 }
 0x1f5   :  { %v758_v31 = vmax.f32 %v754_v27, 0.0  ;;  %v668_v32 = vpop.f32.mrf.mxu3  ;;  %v622_v35 = vpop.f32.mrf.mxu2  ;;  %v1137_v27 = vld [vmem:[#allocation11 + $0x1e0] sm:$0xff] }
 0x1f6   :  { %v727_v36 = vrot.slane %v668_v32, 1  ;;  %1242 = vmatpush.msra.mxu0 %v1137_v27  ;;  %v1134_v32 = vld [vmem:[#allocation11 + $0x1c8] sm:$0xff]  ;;  %v1096_v27 = vld [vmem:[#allocation11 + $0x98] sm:$0xff] }
 0x1f7   :  { %v766_v38 = vmul.f32 %v1780_v28, %v758_v31  ;;  %v1133_v31 = vld [vmem:[#allocation11 + $0x1c0] sm:$0xff] }
 0x1f8   :  { %v728_v39 = vsel %vm344_vm1, %v725_v19, %v727_v36  ;;  %v717_v45 = vpop.f32.mrf.mxu0  ;;  %1243 = vmatpush.msra.mxu0 %v1133_v31  ;;  %v1081_v31 = vld [vmem:[#allocation11 + $0x20] sm:$0xff] }
 0x1f9   :  { %v736_v40 = vadd.f32 %v728_v39, %v619_v15  ;;  %v774_v41 = vadd.f32 %v1781_v33, %v766_v38  ;;  %v748_v48 = vrot.slane %v717_v45, 2  ;;  %v1130_v38 = vld [vmem:[#allocation11 + $0x1a8] sm:$0xff] }
 0x1fa   :  { %1244 = vmatpush.msra.mxu0 %v1129_v37  ;;  %v1126_v45 = vld [vmem:[#allocation11 + $0x188] sm:$0xff]  ;;  %v1127_v37 = vld [vmem:[#allocation11 + $0x190] sm:$0xff] }
 0x1fb   :  { %v755_v44 = vadd.f32 %v747_v42, %v736_v40  ;;  %810 = vmatmul.f32.vlgmr.msra.gmra.mxu1 %v774_v41  ;;  %855 = vmatmul.f32.vlgmr.msra.gmra.mxu2 %v774_v41  ;;  %v749_v56 = vsel %vm364_vm2, %v746_v34, %v748_v48 }
 0x1fc   :  { %900 = vmatmul.f32.vlgmr.msra.gmra.mxu3 %v774_v41  ;;  %945 = vmatmul.f32.vlgmr.msrb.gmra.mxu0 %v774_v41 }
 0x1fd   :  { %v759_v46 = vmax.f32 %v755_v44, 0.0  ;;  %v671_v47 = vpop.f32.mrf.mxu3  ;;  %v625_v51 = vpop.f32.mrf.mxu2  ;;  %v1125_v44 = vld [vmem:[#allocation11 + $0x180] sm:$0xff] }
 0x1fe   :  { %v729_v49 = vrot.slane %v671_v47, 1  ;;  %1245 = vmatpush.msra.mxu0 %v1125_v44  ;;  %v1099_v44 = vld [vmem:[#allocation11 + $0xb0] sm:$0xff] }
 0x1ff   :  { %v767_v50 = vmul.f32 %v1780_v28, %v759_v46 }
 0x200   :  { %v730_v52 = vsel %vm344_vm1, %v727_v36, %v729_v49  ;;  %v738_v54 = vadd.f32 %v729_v49, %v625_v51  ;;  %v1140_v36 = vld [vmem:[#allocation11 + $0x1f8] sm:$0xff]  ;;  %v1121_v51 = vld [vmem:[#allocation11 + $0x160] sm:$0xff] }
 0x201   :  { %v737_v53 = vadd.f32 %v730_v52, %v622_v35  ;;  %v775_v55 = vadd.f32 %v1781_v33, %v767_v50  ;;  %1302 = vmatpush.msra.mxu3 %v1140_v36  ;;  %v1132_v50 = vld [vmem:[#allocation11 + $0x1b8] sm:$0xff]  ;;  %v1122_v52 = vld [vmem:[#allocation11 + $0x168] sm:$0xff]  ;;  %1246 = vmatpush.msra.mxu0 %v1121_v51  ;;  %v1131_v36 = vld [vmem:[#allocation11 + $0x1b0] sm:$0xff] }
 0x202   :  { %v757_v58 = vadd.f32 %v748_v48, %v738_v54  ;;  %v1078_v51 = vld [vmem:[#allocation11 + $0x8] sm:$0xff] }
 0x203   :  { %v756_v57 = vadd.f32 %v749_v56, %v737_v53  ;;  %813 = vmatmul.f32.gmra.mxu1 %v775_v55  ;;  %858 = vmatmul.f32.gmra.mxu2 %v775_v55 }
 0x204   :  { %903 = vmatmul.f32.gmra.mxu3 %v775_v55  ;;  %948 = vmatmul.f32.gmra.mxu0 %v775_v55  ;;  %v761_v61 = vmax.f32 %v757_v58, 0.0  ;;  %v1128_v58 = vld [vmem:[#allocation11 + $0x198] sm:$0xff] }
 0x205   :  { %v760_v59 = vmax.f32 %v756_v57, 0.0  ;;  %1303 = vmatpush.msra.mxu3 %v1136_v43  ;;  %v1103_v43 = vld [vmem:[#allocation11 + $0xd0] sm:$0xff] }
 0x206   :  { %v769_v63 = vmul.f32 %v1780_v28, %v761_v61 }
 0x207   :  { %v768_v60 = vmul.f32 %v1780_v28, %v760_v59  ;;  %v1138_v28 = vld [vmem:[#allocation11 + $0x1e8] sm:$0xff]  ;;  %1304 = vmatpush.msra.mxu3 %v1132_v50  ;;  %v1117_v59 = vld [vmem:[#allocation11 + $0x140] sm:$0xff] }
 0x208   :  { %v777_v0 = vadd.f32 %v1781_v33, %v769_v63  ;;  %1262 = vmatpush.msra.mxu1 %v1138_v28  ;;  %1247 = vmatpush.msra.mxu0 %v1117_v59  ;;  %v1085_v28 = vld [vmem:[#allocation11 + $0x40] sm:$0xff]  ;;  %v1398_v59 = vld [vmem:[#allocation14 + $0x1d0] sm:$0xff] }
 0x209   :  { %v776_v62 = vadd.f32 %v1781_v33, %v768_v60  ;;  %v1118_v60 = vld [vmem:[#allocation11 + $0x148] sm:$0xff]  ;;  %1305 = vmatpush.msra.mxu3 %v1128_v58  ;;  %v1077_v50 = vld [vmem:[#allocation11] sm:$0xff]  ;;  %v1366_v58 = vld [vmem:[#allocation14 + $0xd0] sm:$0xff] }
 0x20a   :  { %1263 = vmatpush.msra.mxu1 %v1134_v32  ;;  %v1082_v32 = vld [vmem:[#allocation11 + $0x28] sm:$0xff] }
 0x20b   :  { %816 = vmatmul.f32.gmra.mxu1 %v776_v62  ;;  %861 = vmatmul.f32.gmra.mxu2 %v776_v62 }
 0x20c   :  { %906 = vmatmul.f32.gmra.mxu3 %v776_v62  ;;  %951 = vmatmul.f32.gmra.mxu0 %v776_v62 }
 0x20d   :  { %1264 = vmatpush.msra.mxu1 %v1130_v38  ;;  %v1123_v38 = vld [vmem:[#allocation11 + $0x170] sm:$0xff] }
 0x20f   :  { %1265 = vmatpush.msra.mxu1 %v1126_v45  ;;  %v1095_v45 = vld [vmem:[#allocation11 + $0x90] sm:$0xff] }
 0x211   :  { %1266 = vmatpush.msra.mxu1 %v1122_v52  ;;  %v1079_v52 = vld [vmem:[#allocation11 + $0x10] sm:$0xff] }
 0x213   :  { %819 = vmatmul.f32.gmra.mxu1 %v777_v0  ;;  %864 = vmatmul.f32.gmra.mxu2 %v777_v0 }
 0x214   :  { %909 = vmatmul.f32.gmra.mxu3 %v777_v0  ;;  %954 = vmatmul.f32.gmra.mxu0 %v777_v0 }
 0x215   :  { %1267 = vmatpush.msra.mxu1 %v1118_v60  ;;  %v1434_v60 = vld [vmem:[#allocation14 + $0x2f0] sm:$0xff] }
 0x21b   :  { %990 = vmatmul.f32.vlgmr.msrb.gmra.mxu1 %v774_v41 }
 0x223   :  { %992 = vmatmul.f32.gmra.mxu1 %v775_v55 }
 0x22b   :  { %995 = vmatmul.f32.gmra.mxu1 %v776_v62 }
 0x233   :  { %998 = vmatmul.f32.gmra.mxu1 %v777_v0  ;;  %v1124_v0 = vld [vmem:[#allocation11 + $0x178] sm:$0xff] }
 0x234   :  { %1306 = vmatpush.msra.mxu3 %v1124_v0  ;;  %v1466_v0 = vld [vmem:[#allocation14 + $0x3f0] sm:$0xff] }
 0x278   :  { %v811_v1 = vpop.f32.mrf.mxu1 }
 0x279   :  { %v2307_v2 = vpop.f32.mrf.mxu0 }
 0x27a   :  { %v1035_v53 = vrot.slane %v2307_v2, 6  ;;  %v1114_v2 = vld [vmem:[#allocation11 + $0x128] sm:$0xff] }
 0x27b   :  { %1268 = vmatpush.msra.mxu1 %v1114_v2  ;;  %v1464_v2 = vld [vmem:[#allocation14 + $0x3e0] sm:$0xff] }
 0x27e   :  { %v856_v3 = vpop.f32.mrf.mxu2 }
 0x27f   :  { %v901_v4 = vpop.f32.mrf.mxu3  ;;  %v1005_v21 = vrot.slane %v856_v3, 2  ;;  %v1049_v3 = vld [vmem:[%s2373_s28] sm:$0x3] }
 0x280   :  { %v814_v5 = vpop.f32.mrf.mxu1  ;;  %v1020_v39 = vrot.slane %v901_v4, 4 }
 0x281   :  { %v2309_v6 = vpop.f32.mrf.mxu0 }
 0x282   :  { %v1036_v46 = vrot.slane %v2309_v6, 6  ;;  %v1109_v6 = vld [vmem:[#allocation11 + $0x100] sm:$0xff] }
 0x284   :  { %v1037_v61 = vsel %vm1034_vm4, %v1035_v53, %v1036_v46  ;;  %v1080_v53 = vld [vmem:[#allocation11 + $0x18] sm:$0xff] }
 0x286   :  { %v859_v7 = vpop.f32.mrf.mxu2 }
 0x287   :  { %v904_v8 = vpop.f32.mrf.mxu3  ;;  %v1006_v20 = vrot.slane %v859_v7, 2  ;;  %v1110_v7 = vld [vmem:[#allocation11 + $0x108] sm:$0xff] }
 0x288   :  { %v817_v9 = vpop.f32.mrf.mxu1  ;;  %v1021_v33 = vrot.slane %v904_v8, 4  ;;  %v1142_v8 = vld [vmem:[#allocation13] sm:$0x7f]  ;;  %1269 = vmatpush.msra.mxu1 %v1110_v7 }
 0x289   :  { %v952_v10 = vpop.f32.mrf.mxu0  ;;  %v1007_v24 = vsel %vm364_vm2, %v1005_v21, %v1006_v20  ;;  %v1093_v21 = vld [vmem:[#allocation11 + $0x80] sm:$0xff] }
 0x28a   :  { %v1013_v34 = vadd.f32 %v1007_v24, %v811_v1  ;;  %v1038_v40 = vrot.slane %v952_v10, 6  ;;  %v1022_v47 = vsel %vm1019_vm3, %v1020_v39, %v1021_v33  ;;  %v1113_v1 = vld [vmem:[#allocation11 + $0x120] sm:$0xff]  ;;  %v1116_v10 = vld [vmem:[#allocation11 + $0x138] sm:$0xff]  ;;  %v1119_v39 = vld [vmem:[#allocation11 + $0x150] sm:$0xff] }
 0x28b   :  { %1248 = vmatpush.msra.mxu0 %v1113_v1  ;;  %v1100_v24 = vld [vmem:[#allocation11 + $0xb8] sm:$0xff]  ;;  %v1430_v1 = vld [vmem:[#allocation14 + $0x2d0] sm:$0xff]  ;;  %v1360_v7 = vld [vmem:[#allocation14 + $0xa0] sm:$0xff] }
 0x28c   :  { %v1028_v48 = vadd.f32 %v1022_v47, %v1013_v34  ;;  %v1039_v54 = vsel %vm1034_vm4, %v1036_v46, %v1038_v40  ;;  %v1139_v34 = vld [vmem:[#allocation11 + $0x1f0] sm:$0xff] }
 0x28d   :  { %1249 = vmatpush.msra.mxu0 %v1109_v6  ;;  %v1091_v46 = vld [vmem:[#allocation11 + $0x70] sm:$0xff] }
 0x28e   :  { %v862_v11 = vpop.f32.mrf.mxu2  ;;  %v1043_v62 = vadd.f32 %v1037_v61, %v1028_v48  ;;  %v1087_v47 = vld [vmem:[#allocation11 + $0x50] sm:$0xff]  ;;  %v1432_v61 = vld [vmem:[#allocation14 + $0x2e0] sm:$0xff] }
 0x28f   :  { %v907_v12 = vpop.f32.mrf.mxu3  ;;  %v1008_v19 = vrot.slane %v862_v11, 2  ;;  %v1105_v11 = vld [vmem:[#allocation11 + $0xe0] sm:$0xff]  ;;  %v1083_v48 = vld [vmem:[#allocation11 + $0x30] sm:$0xff] }
 0x290   :  { %v820_v13 = vpop.f32.mrf.mxu1  ;;  %v1023_v25 = vrot.slane %v907_v12, 4  ;;  %v1106_v12 = vld [vmem:[#allocation11 + $0xe8] sm:$0xff]  ;;  %1250 = vmatpush.msra.mxu0 %v1105_v11  ;;  %v1462_v6 = vld [vmem:[#allocation14 + $0x3d0] sm:$0xff] }
 0x291   :  { %v955_v14 = vpop.f32.mrf.mxu0  ;;  %v1009_v22 = vsel %vm364_vm2, %v1006_v20, %v1008_v19  ;;  %v1015_v23 = vadd.f32 %v1008_v19, %v817_v9  ;;  %v1143_v9 = vld [vmem:[#allocation13 + $0x8] sm:$0x7f]  ;;  %v1112_v13 = vld [vmem:[#allocation11 + $0x118] sm:$0xff]  ;;  %1270 = vmatpush.msra.mxu1 %v1106_v12  ;;  %v1358_v11 = vld [vmem:[#allocation14 + $0x90] sm:$0xff] }
 0x292   :  { %v1014_v29 = vadd.f32 %v1009_v22, %v814_v5  ;;  %v1024_v41 = vsel %vm1019_vm3, %v1021_v33, %v1023_v25  ;;  %v1120_v5 = vld [vmem:[#allocation11 + $0x158] sm:$0xff]  ;;  %v1101_v14 = vld [vmem:[#allocation11 + $0xc0] sm:$0xff]  ;;  %v1098_v19 = vld [vmem:[#allocation11 + $0xa8] sm:$0xff] }
 0x293   :  { %v1030_v35 = vadd.f32 %v1023_v25, %v1015_v23  ;;  %1307 = vmatpush.msra.mxu3 %v1120_v5  ;;  %1251 = vmatpush.msra.mxu0 %v1101_v14  ;;  %v1104_v20 = vld [vmem:[#allocation11 + $0xd8] sm:$0xff]  ;;  %v1144_v22 = vld [vmem:[#allocation13 + $0x10] sm:$0x7f]  ;;  %v1094_v23 = vld [vmem:[#allocation11 + $0x88] sm:$0xff] }
 0x294   :  { %v1029_v42 = vadd.f32 %v1024_v41, %v1014_v29  ;;  %v1089_v25 = vld [vmem:[#allocation11 + $0x60] sm:$0xff]  ;;  %v1086_v29 = vld [vmem:[#allocation11 + $0x48] sm:$0xff]  ;;  %v1088_v33 = vld [vmem:[#allocation11 + $0x58] sm:$0xff] }
 0x295   :  { %v1045_v49 = vadd.f32 %v1038_v40, %v1030_v35  ;;  %1308 = vmatpush.msra.mxu3 %v1116_v10  ;;  %v1135_v35 = vld [vmem:[#allocation11 + $0x1d0] sm:$0xff]  ;;  %v1428_v5 = vld [vmem:[#allocation14 + $0x2c0] sm:$0xff] }
 0x296   :  { %v865_v15 = vpop.f32.mrf.mxu2  ;;  %v1044_v56 = vadd.f32 %v1039_v54, %v1029_v42  ;;  %v1115_v40 = vld [vmem:[#allocation11 + $0x130] sm:$0xff]  ;;  %v1460_v10 = vld [vmem:[#allocation14 + $0x3c0] sm:$0xff] }
 0x297   :  { %v910_v16 = vpop.f32.mrf.mxu3  ;;  %v1102_v15 = vld [vmem:[#allocation11 + $0xc8] sm:$0xff]  ;;  %1309 = vmatpush.msra.mxu3 %v1112_v13  ;;  %v1111_v41 = vld [vmem:[#allocation11 + $0x110] sm:$0xff]  ;;  %v1424_v13 = vld [vmem:[#allocation14 + $0x2a0] sm:$0xff] }
 0x298   :  { %v991_v17 = vpop.f32.mrf.mxu1  ;;  %v1141_v16 = vld [vmem:[%s2374_s24] sm:$0x3]  ;;  %1271 = vmatpush.msra.mxu1 %v1102_v15  ;;  %v1356_v15 = vld [vmem:[#allocation14 + $0x80] sm:$0xff] }
 0x299   :  { %v1108_v17 = vld [vmem:[#allocation11 + $0xf8] sm:$0xff]  ;;  %1758 = vmatmul.msk.f32.vlgmr.msrb.gmra.mxu3 %vm1146_vm6, %v1141_v16  ;;  %v1107_v42 = vld [vmem:[#allocation11 + $0xf0] sm:$0xff] }
 0x29a   :  { %1310 = vmatpush.msra.mxu3 %v1108_v17  ;;  %1272 = vmatpush.msra.mxu1 %v1098_v19  ;;  %v1370_v54 = vld [vmem:[#allocation14 + $0xf0] sm:$0xff] }
 0x29b   :  { %v1390_v12 = vld [vmem:[#allocation14 + $0x190] sm:$0xff] }
 0x29c   :  { %1311 = vmatpush.msra.mxu3 %v1104_v20  ;;  %1273 = vmatpush.msra.mxu1 %v1094_v23  ;;  %v1458_v14 = vld [vmem:[#allocation14 + $0x3b0] sm:$0xff]  ;;  %v1352_v23 = vld [vmem:[#allocation14 + $0x60] sm:$0xff] }
 0x29d   :  { %v1422_v17 = vld [vmem:[#allocation14 + $0x290] sm:$0xff] }
 0x29e   :  { %1312 = vmatpush.msra.mxu3 %v1100_v24  ;;  %v1354_v19 = vld [vmem:[#allocation14 + $0x70] sm:$0xff]  ;;  %v1384_v24 = vld [vmem:[#allocation14 + $0x160] sm:$0xff] }
 0x29f   :  { %v1386_v20 = vld [vmem:[#allocation14 + $0x170] sm:$0xff] }
 0x2a0   :  { %v2311_v18 = vpop.f32.mrf.mxu1  ;;  %1313 = vmatpush.msra.mxu3 %v1096_v27  ;;  %v1350_v27 = vld [vmem:[#allocation14 + $0x50] sm:$0xff] }
 0x2a1   :  { %v1046_v4 = vadd.f32 %v1043_v62, %v2311_v18  ;;  %v1097_v18 = vld [vmem:[#allocation11 + $0xa0] sm:$0xff] }
 0x2a2   :  { %1252 = vmatpush.msra.mxu0 %v1097_v18  ;;  %1314 = vmatpush.msra.mxu3 %v1092_v30  ;;  %v1364_v62 = vld [vmem:[#allocation14 + $0xc0] sm:$0xff]  ;;  %v1450_v30 = vld [vmem:[#allocation14 + $0x370] sm:$0xff] }
 0x2a3   :  { %v1456_v18 = vld [vmem:[#allocation14 + $0x3a0] sm:$0xff] }
 0x2a4   :  { %1253 = vmatpush.msra.mxu0 %v1093_v21  ;;  %1315 = vmatpush.msra.mxu3 %v1088_v33  ;;  %v1420_v21 = vld [vmem:[#allocation14 + $0x280] sm:$0xff]  ;;  %v1414_v33 = vld [vmem:[#allocation14 + $0x250] sm:$0xff] }
 0x2a6   :  { %1254 = vmatpush.msra.mxu0 %v1089_v25  ;;  %v1418_v25 = vld [vmem:[#allocation14 + $0x270] sm:$0xff] }
 0x2a8   :  { %v996_v26 = vpop.f32.mrf.mxu1  ;;  %1255 = vmatpush.msra.mxu0 %v1085_v28  ;;  %v1382_v28 = vld [vmem:[#allocation14 + $0x150] sm:$0xff] }
 0x2a9   :  { %v1047_v63 = vadd.f32 %v1044_v56, %v996_v26  ;;  %v1090_v26 = vld [vmem:[#allocation11 + $0x68] sm:$0xff]  ;;  %v1368_v56 = vld [vmem:[#allocation14 + $0xe0] sm:$0xff] }
 0x2aa   :  { %1274 = vmatpush.msra.mxu1 %v1090_v26  ;;  %1256 = vmatpush.msra.mxu0 %v1081_v31  ;;  %v1452_v26 = vld [vmem:[#allocation14 + $0x380] sm:$0xff] }
 0x2ab   :  { %v1348_v31 = vld [vmem:[#allocation14 + $0x40] sm:$0xff] }
 0x2ac   :  { %1275 = vmatpush.msra.mxu1 %v1086_v29  ;;  %1257 = vmatpush.msra.mxu0 %v1077_v50  ;;  %v1416_v29 = vld [vmem:[#allocation14 + $0x260] sm:$0xff]  ;;  %v1371_v50 = vld [vmem:[#allocation14 + $0xf8] sm:$0xff] }
 0x2ae   :  { %1276 = vmatpush.msra.mxu1 %v1082_v32  ;;  %1474 = vmatpush.msrb.mxu0 %v1370_v54  ;;  %v1380_v32 = vld [vmem:[#allocation14 + $0x140] sm:$0xff]  ;;  %v1369_v54 = vld [vmem:[#allocation14 + $0xe8] sm:$0xff] }
 0x2b0   :  { %v999_v55 = vpop.f32.mrf.mxu1  ;;  %1277 = vmatpush.msra.mxu1 %v1078_v51  ;;  %1475 = vmatpush.msrb.mxu0 %v1368_v56  ;;  %v1403_v51 = vld [vmem:[#allocation14 + $0x1f8] sm:$0xff]  ;;  %v1404_v56 = vld [vmem:[#allocation14 + $0x200] sm:$0xff] }
 0x2b1   :  { %v1048_v57 = vadd.f32 %v1045_v49, %v999_v55  ;;  %v1084_v49 = vld [vmem:[#allocation11 + $0x38] sm:$0xff]  ;;  %v1402_v55 = vld [vmem:[#allocation14 + $0x1f0] sm:$0xff] }
 0x2b2   :  { %1316 = vmatpush.msra.mxu3 %v1084_v49  ;;  %1494 = vmatpush.msrb.mxu1 %v1402_v55  ;;  %v1372_v49 = vld [vmem:[#allocation14 + $0x100] sm:$0xff]  ;;  %v1401_v55 = vld [vmem:[#allocation14 + $0x1e8] sm:$0xff] }
 0x2b3   :  { %1749 = vmatpush.msk.msrb.mxu2 %vm1034_vm4, %v1048_v57  ;;  %v1400_v57 = vld [vmem:[#allocation14 + $0x1e0] sm:$0xff]  ;;  %1476 = vmatpush.msrb.mxu0 %v1366_v58  ;;  %v1367_v58 = vld [vmem:[#allocation14 + $0xd8] sm:$0xff] }
 0x2b4   :  { %1317 = vmatpush.msra.mxu3 %v1080_v53  ;;  %1495 = vmatpush.msrb.mxu1 %v1400_v57  ;;  %v1440_v53 = vld [vmem:[#allocation14 + $0x320] sm:$0xff]  ;;  %v1438_v57 = vld [vmem:[#allocation14 + $0x310] sm:$0xff] }
 0x2b5   :  { %1071 = vmatpush.msrb.mxu2 %v1047_v63  ;;  %v1396_v63 = vld [vmem:[#allocation14 + $0x1c0] sm:$0xff]  ;;  %1477 = vmatpush.msrb.mxu0 %v1364_v62  ;;  %v1365_v62 = vld [vmem:[#allocation14 + $0xc8] sm:$0xff] }
 0x2b6   :  { %1496 = vmatpush.msrb.mxu1 %v1398_v59  ;;  %1534 = vmatpush.msrb.mxu3 %v1466_v0  ;;  %v1399_v59 = vld [vmem:[#allocation14 + $0x1d8] sm:$0xff]  ;;  %v1433_v0 = vld [vmem:[#allocation14 + $0x2e8] sm:$0xff] }
 0x2b7   :  { %1072 = vmatpush.msrb.mxu2 %v1046_v4  ;;  %v1394_v4 = vld [vmem:[#allocation14 + $0x1b0] sm:$0xff] }
 0x2b8   :  { %1750 = vmatmul.msk.f32.vlgmr.msrb.gmra.mxu2 %vm1050_vm5, %v1049_v3  ;;  %v1362_v3 = vld [vmem:[#allocation14 + $0xb0] sm:$0xff]  ;;  %1497 = vmatpush.msrb.mxu1 %v1396_v63  ;;  %v1397_v63 = vld [vmem:[#allocation14 + $0x1c8] sm:$0xff] }
 0x2b9   :  { %1751 = vmatpush.msk.msra.mxu2 %vm344_vm1, %v1142_v8  ;;  %v1392_v8 = vld [vmem:[#allocation14 + $0x1a0] sm:$0xff]  ;;  %1535 = vmatpush.msrb.mxu3 %v1464_v2  ;;  %v1363_v2 = vld [vmem:[#allocation14 + $0xb8] sm:$0xff] }
 0x2ba   :  { %1478 = vmatpush.msrb.mxu0 %v1362_v3  ;;  %1498 = vmatpush.msrb.mxu1 %v1394_v4  ;;  %v1395_v3 = vld [vmem:[#allocation14 + $0x1b8] sm:$0xff] }
 0x2bb   :  { %1753 = vmatpush.msk.msrb.mxu2 %vm344_vm1, %v1143_v9  ;;  %v1426_v9 = vld [vmem:[#allocation14 + $0x2b0] sm:$0xff]  ;;  %1536 = vmatpush.msrb.mxu3 %v1462_v6  ;;  %v1431_v4 = vld [vmem:[#allocation14 + $0x2d8] sm:$0xff]  ;;  %v1361_v6 = vld [vmem:[#allocation14 + $0xa8] sm:$0xff] }
 0x2bc   :  { %1479 = vmatpush.msrb.mxu0 %v1360_v7  ;;  %1499 = vmatpush.msrb.mxu1 %v1392_v8  ;;  %v1393_v7 = vld [vmem:[#allocation14 + $0x1a8] sm:$0xff] }
 0x2bd   :  { %1537 = vmatpush.msrb.mxu3 %v1460_v10  ;;  %v1429_v8 = vld [vmem:[#allocation14 + $0x2c8] sm:$0xff]  ;;  %v1359_v10 = vld [vmem:[#allocation14 + $0x98] sm:$0xff] }
 0x2be   :  { %1480 = vmatpush.msrb.mxu0 %v1358_v11  ;;  %1500 = vmatpush.msrb.mxu1 %v1390_v12  ;;  %v1391_v11 = vld [vmem:[#allocation14 + $0x198] sm:$0xff] }
 0x2bf   :  { %1538 = vmatpush.msrb.mxu3 %v1458_v14  ;;  %v1427_v12 = vld [vmem:[#allocation14 + $0x2b8] sm:$0xff]  ;;  %v1357_v14 = vld [vmem:[#allocation14 + $0x88] sm:$0xff] }
 0x2c0   :  { %1752 = vmatmul.msk.f32.vlgmr.msra.gmra.mxu2 %vm1146_vm6, %v1141_v16  ;;  %1481 = vmatpush.msrb.mxu0 %v1356_v15  ;;  %v1389_v15 = vld [vmem:[#allocation14 + $0x188] sm:$0xff] }
 0x2c1   :  { %1755 = vmatpush.msk.msra.mxu2 %vm344_vm1, %v1144_v22  ;;  %v1454_v22 = vld [vmem:[#allocation14 + $0x390] sm:$0xff]  ;;  %1539 = vmatpush.msrb.mxu3 %v1456_v18  ;;  %v1387_v18 = vld [vmem:[#allocation14 + $0x178] sm:$0xff] }
 0x2c2   :  { %1482 = vmatpush.msrb.mxu0 %v1354_v19  ;;  %v1425_v19 = vld [vmem:[#allocation14 + $0x2a8] sm:$0xff] }
 0x2c3   :  { %1540 = vmatpush.msrb.mxu3 %v1454_v22  ;;  %v1385_v22 = vld [vmem:[#allocation14 + $0x168] sm:$0xff] }
 0x2c4   :  { %1483 = vmatpush.msrb.mxu0 %v1352_v23  ;;  %v1423_v23 = vld [vmem:[#allocation14 + $0x298] sm:$0xff] }
 0x2c5   :  { %1541 = vmatpush.msrb.mxu3 %v1452_v26  ;;  %v1383_v26 = vld [vmem:[#allocation14 + $0x158] sm:$0xff] }
 0x2c6   :  { %1484 = vmatpush.msrb.mxu0 %v1350_v27  ;;  %v1421_v27 = vld [vmem:[#allocation14 + $0x288] sm:$0xff] }
 0x2c7   :  { %1542 = vmatpush.msrb.mxu3 %v1450_v30  ;;  %v1381_v30 = vld [vmem:[#allocation14 + $0x148] sm:$0xff] }
 0x2c8   :  { %1754 = vmatmul.msk.f32.vlgmr.msrb.gmra.mxu2 %vm1146_vm6, %v1141_v16  ;;  %1485 = vmatpush.msrb.mxu0 %v1348_v31  ;;  %v1419_v31 = vld [vmem:[#allocation14 + $0x278] sm:$0xff] }
 0x2c9   :  { %1282 = vmatpush.msrb.mxu2 %v1139_v34  ;;  %v1448_v34 = vld [vmem:[#allocation14 + $0x360] sm:$0xff] }
 0x2ca   :  { %1543 = vmatpush.msrb.mxu3 %v1448_v34  ;;  %v1379_v34 = vld [vmem:[#allocation14 + $0x138] sm:$0xff] }
 0x2cb   :  { %1283 = vmatpush.msrb.mxu2 %v1135_v35  ;;  %v1346_v35 = vld [vmem:[#allocation14 + $0x30] sm:$0xff] }
 0x2cc   :  { %1486 = vmatpush.msrb.mxu0 %v1346_v35  ;;  %v1417_v35 = vld [vmem:[#allocation14 + $0x268] sm:$0xff] }
 0x2cd   :  { %1284 = vmatpush.msrb.mxu2 %v1131_v36  ;;  %v1378_v36 = vld [vmem:[#allocation14 + $0x130] sm:$0xff] }
 0x2cf   :  { %1285 = vmatpush.msrb.mxu2 %v1127_v37  ;;  %v1412_v37 = vld [vmem:[#allocation14 + $0x240] sm:$0xff] }
 0x2d0   :  { %1756 = vmatmul.msk.f32.vlgmr.msra.gmra.mxu2 %vm1146_vm6, %v1141_v16  ;;  %v1388_v16 = vld [vmem:[#allocation14 + $0x180] sm:$0xff] }
 0x2d1   :  { %1286 = vmatpush.msrb.mxu2 %v1123_v38  ;;  %1501 = vmatpush.msrb.mxu1 %v1388_v16  ;;  %v1446_v38 = vld [vmem:[#allocation14 + $0x350] sm:$0xff]  ;;  %v1459_v16 = vld [vmem:[#allocation14 + $0x3b8] sm:$0xff] }
 0x2d2   :  { %1544 = vmatpush.msrb.mxu3 %v1446_v38  ;;  %v1377_v38 = vld [vmem:[#allocation14 + $0x128] sm:$0xff] }
 0x2d3   :  { %1287 = vmatpush.msrb.mxu2 %v1119_v39  ;;  %1502 = vmatpush.msrb.mxu1 %v1386_v20  ;;  %v1344_v39 = vld [vmem:[#allocation14 + $0x20] sm:$0xff]  ;;  %v1457_v20 = vld [vmem:[#allocation14 + $0x3a8] sm:$0xff] }
 0x2d4   :  { %1487 = vmatpush.msrb.mxu0 %v1344_v39  ;;  %v1415_v39 = vld [vmem:[#allocation14 + $0x258] sm:$0xff] }
 0x2d5   :  { %1288 = vmatpush.msrb.mxu2 %v1115_v40  ;;  %1503 = vmatpush.msrb.mxu1 %v1384_v24  ;;  %v1376_v40 = vld [vmem:[#allocation14 + $0x120] sm:$0xff]  ;;  %v1455_v24 = vld [vmem:[#allocation14 + $0x398] sm:$0xff] }
 0x2d7   :  { %1289 = vmatpush.msrb.mxu2 %v1111_v41  ;;  %1504 = vmatpush.msrb.mxu1 %v1382_v28  ;;  %v1410_v41 = vld [vmem:[#allocation14 + $0x230] sm:$0xff]  ;;  %v1453_v28 = vld [vmem:[#allocation14 + $0x388] sm:$0xff] }
 0x2d9   :  { %1290 = vmatpush.msrb.mxu2 %v1107_v42  ;;  %1505 = vmatpush.msrb.mxu1 %v1380_v32  ;;  %v1444_v42 = vld [vmem:[#allocation14 + $0x340] sm:$0xff]  ;;  %v1451_v32 = vld [vmem:[#allocation14 + $0x378] sm:$0xff] }
 0x2da   :  { %1545 = vmatpush.msrb.mxu3 %v1444_v42  ;;  %v1343_v42 = vld [vmem:[#allocation14 + $0x18] sm:$0xff] }
 0x2db   :  { %1291 = vmatpush.msrb.mxu2 %v1103_v43  ;;  %1506 = vmatpush.msrb.mxu1 %v1378_v36  ;;  %v1342_v43 = vld [vmem:[#allocation14 + $0x10] sm:$0xff]  ;;  %v1449_v36 = vld [vmem:[#allocation14 + $0x368] sm:$0xff] }
 0x2dc   :  { %1488 = vmatpush.msrb.mxu0 %v1342_v43  ;;  %v1375_v43 = vld [vmem:[#allocation14 + $0x118] sm:$0xff] }
 0x2dd   :  { %1292 = vmatpush.msrb.mxu2 %v1099_v44  ;;  %v1374_v44 = vld [vmem:[#allocation14 + $0x110] sm:$0xff]  ;;  %1507 = vmatpush.msrb.mxu1 %v1376_v40 }
 0x2df   :  { %1293 = vmatpush.msrb.mxu2 %v1095_v45  ;;  %v1408_v45 = vld [vmem:[#allocation14 + $0x220] sm:$0xff]  ;;  %1508 = vmatpush.msrb.mxu1 %v1374_v44  ;;  %v1413_v44 = vld [vmem:[#allocation14 + $0x248] sm:$0xff] }
 0x2e1   :  { %1294 = vmatpush.msrb.mxu2 %v1091_v46  ;;  %v1442_v46 = vld [vmem:[#allocation14 + $0x330] sm:$0xff]  ;;  %1509 = vmatpush.msrb.mxu1 %v1372_v49  ;;  %v1409_v49 = vld [vmem:[#allocation14 + $0x228] sm:$0xff] }
 0x2e2   :  { %1546 = vmatpush.msrb.mxu3 %v1442_v46  ;;  %v1341_v46 = vld [vmem:[#allocation14 + $0x8] sm:$0xff] }
 0x2e3   :  { %1295 = vmatpush.msrb.mxu2 %v1087_v47 }
 0x2e4   :  { %1547 = vmatpush.msrb.mxu3 %v1440_v53  ;;  %v1439_v53 = vld [vmem:[#allocation14 + $0x318] sm:$0xff] }
 0x2e5   :  { %1296 = vmatpush.msrb.mxu2 %v1083_v48  ;;  %v1340_v48 = vld [vmem:[#allocation14] sm:$0xff] }
 0x2e6   :  { %1489 = vmatpush.msrb.mxu0 %v1340_v48  ;;  %1548 = vmatpush.msrb.mxu3 %v1438_v57  ;;  %v1411_v48 = vld [vmem:[#allocation14 + $0x238] sm:$0xff]  ;;  %v1322_v57 = vld [vmem:[%s2357_s14] sm:$0xf]  ;;  %s2104_s14 = smov [#allocation20]  }
 0x2e7   :  { %1297 = vmatpush.msrb.mxu2 %v1079_v52  ;;  %v1406_v52 = vld [vmem:[#allocation14 + $0x210] sm:$0xff]  ;;  %s1720_s11 = sshll.u32 %s2104_s14, 4  ;;  %s1721_s11 = int_to_ptr.vmem [resolvable:$true] %s1720_s11 }
 0x2e9   :  { %1514 = vmatpush.msra.mxu2 %v1434_v60  ;;  %v1435_v60 = vld [vmem:[#allocation14 + $0x2f8] sm:$0xff] }
 0x2eb   :  { %1515 = vmatpush.msra.mxu2 %v1432_v61  ;;  %v1436_v61 = vld [vmem:[#allocation14 + $0x300] sm:$0xff] }
 0x2ec   :  { %1549 = vmatpush.msrb.mxu3 %v1436_v61  ;;  %v1325_v61 = vperm.slane %v1322_v57, 1 }
 0x2ed   :  { %1516 = vmatpush.msra.mxu2 %v1430_v1  ;;  %v1467_v1 = vld [vmem:[#allocation14 + $0x3f8] sm:$0xff] }
 0x2ef   :  { %1517 = vmatpush.msra.mxu2 %v1428_v5  ;;  %v1465_v5 = vld [vmem:[#allocation14 + $0x3e8] sm:$0xff] }
 0x2f1   :  { %1518 = vmatpush.msra.mxu2 %v1426_v9  ;;  %v1463_v9 = vld [vmem:[#allocation14 + $0x3d8] sm:$0xff] }
 0x2f3   :  { %1519 = vmatpush.msra.mxu2 %v1424_v13  ;;  %v1461_v13 = vld [vmem:[#allocation14 + $0x3c8] sm:$0xff] }
 0x2f5   :  { %1520 = vmatpush.msra.mxu2 %v1422_v17  ;;  %v1355_v17 = vld [vmem:[#allocation14 + $0x78] sm:$0xff] }
 0x2f7   :  { %1521 = vmatpush.msra.mxu2 %v1420_v21  ;;  %v1353_v21 = vld [vmem:[#allocation14 + $0x68] sm:$0xff] }
 0x2f9   :  { %1522 = vmatpush.msra.mxu2 %v1418_v25  ;;  %v1351_v25 = vld [vmem:[#allocation14 + $0x58] sm:$0xff] }
 0x2fb   :  { %1523 = vmatpush.msra.mxu2 %v1416_v29  ;;  %v1349_v29 = vld [vmem:[#allocation14 + $0x48] sm:$0xff] }
 0x2fd   :  { %1524 = vmatpush.msra.mxu2 %v1414_v33  ;;  %v1347_v33 = vld [vmem:[#allocation14 + $0x38] sm:$0xff] }
 0x2ff   :  { %1525 = vmatpush.msra.mxu2 %v1412_v37  ;;  %v1345_v37 = vld [vmem:[#allocation14 + $0x28] sm:$0xff] }
 0x301   :  { %1526 = vmatpush.msra.mxu2 %v1410_v41  ;;  %v1447_v41 = vld [vmem:[#allocation14 + $0x358] sm:$0xff] }
 0x303   :  { %1527 = vmatpush.msra.mxu2 %v1408_v45  ;;  %v1445_v45 = vld [vmem:[#allocation14 + $0x348] sm:$0xff] }
 0x305   :  { %1528 = vmatpush.msra.mxu2 %v1406_v52  ;;  %v1407_v52 = vld [vmem:[#allocation14 + $0x218] sm:$0xff] }
 0x307   :  { %1529 = vmatpush.msra.mxu2 %v1404_v56 }
 0x33b   :  { %v1074_v47 = vpop.f32.mrf.mxu2 }
 0x33c   :  { %1258 = vmatmul.f32.vlgmr.msra.gmra.mxu0 %v1074_v47  ;;  %1278 = vmatmul.f32.vlgmr.msra.gmra.mxu1 %v1074_v47 }
 0x33d   :  { %1298 = vmatmul.f32.vlgmr.msrb.gmra.mxu2 %v1074_v47  ;;  %1318 = vmatmul.f32.vlgmr.msra.gmra.mxu3 %v1074_v47  ;;  %v1373_v47 = vld [vmem:[#allocation14 + $0x108] sm:$0xff] }
 0x33e   :  { %1554 = vmatpush.msra.mxu0 %v1371_v50  ;;  %1574 = vmatpush.msra.mxu1 %v1403_v51  ;;  %v1443_v50 = vld [vmem:[#allocation14 + $0x338] sm:$0xff]  ;;  %v1441_v51 = vld [vmem:[#allocation14 + $0x328] sm:$0xff] }
 0x33f   :  { %1594 = vmatpush.msrb.mxu2 %v1435_v60  ;;  %1614 = vmatpush.msra.mxu3 %v1467_v1  ;;  %v1324_v60 = vperm.slane %v1322_v57, 0 }
 0x340   :  { %1555 = vmatpush.msra.mxu0 %v1369_v54  ;;  %1575 = vmatpush.msra.mxu1 %v1401_v55  ;;  %v1405_v54 = vld [vmem:[#allocation14 + $0x208] sm:$0xff] }
 0x341   :  { %1595 = vmatpush.msrb.mxu2 %v1433_v0  ;;  %1615 = vmatpush.msra.mxu3 %v1465_v5  ;;  %v1437_v55 = vld [vmem:[#allocation14 + $0x308] sm:$0xff] }
 0x342   :  { %1556 = vmatpush.msra.mxu0 %v1367_v58  ;;  %1576 = vmatpush.msra.mxu1 %v1399_v59  ;;  %v1239_v59 = vpop.f32.mrf.mxu3 }
 0x343   :  { %1596 = vmatpush.msrb.mxu2 %v1431_v4  ;;  %1616 = vmatpush.msra.mxu3 %v1463_v9  ;;  %v1179_v40 = vpop.f32.mrf.mxu2  ;;  %v1327_v9 = vperm.slane %v1322_v57, 3 }
 0x344   :  { %1557 = vmatpush.msra.mxu0 %v1365_v62  ;;  %1577 = vmatpush.msra.mxu1 %v1397_v63 }
 0x345   :  { %1597 = vmatpush.msrb.mxu2 %v1429_v8  ;;  %1617 = vmatpush.msra.mxu3 %v1461_v13  ;;  %v1326_v8 = vperm.slane %v1322_v57, 2  ;;  %v1666_v13 = vld [vmem:[#allocation17 + $0xf0] sm:$0xff] }
 0x346   :  { %1558 = vmatpush.msra.mxu0 %v1363_v2  ;;  %1578 = vmatpush.msra.mxu1 %v1395_v3 }
 0x347   :  { %1598 = vmatpush.msrb.mxu2 %v1427_v12  ;;  %1618 = vmatpush.msra.mxu3 %v1459_v16  ;;  %v1650_v12 = vld [vmem:[#allocation17 + $0x70] sm:$0xff]  ;;  %v1649_v16 = vld [vmem:[#allocation17 + $0x68] sm:$0xff] }
 0x348   :  { %1559 = vmatpush.msra.mxu0 %v1361_v6  ;;  %1579 = vmatpush.msra.mxu1 %v1393_v7  ;;  %v1651_v6 = vld [vmem:[#allocation17 + $0x78] sm:$0xff] }
 0x349   :  { %1599 = vmatpush.msrb.mxu2 %v1425_v19  ;;  %1619 = vmatpush.msra.mxu3 %v1457_v20  ;;  %v1667_v7 = vld [vmem:[#allocation17 + $0xf8] sm:$0xff] }
 0x34a   :  { %1560 = vmatpush.msra.mxu0 %v1359_v10  ;;  %1580 = vmatpush.msra.mxu1 %v1391_v11 }
 0x34b   :  { %1600 = vmatpush.msrb.mxu2 %v1423_v23  ;;  %1620 = vmatpush.msra.mxu3 %v1455_v24  ;;  %v1199_v56 = vpop.f32.mrf.mxu2  ;;  %v1646_v23 = vld [vmem:[#allocation17 + $0x50] sm:$0xff]  ;;  %v1645_v24 = vld [vmem:[#allocation17 + $0x48] sm:$0xff] }
 0x34c   :  { %1561 = vmatpush.msra.mxu0 %v1357_v14  ;;  %1581 = vmatpush.msra.mxu1 %v1389_v15 }
 0x34d   :  { %1601 = vmatpush.msrb.mxu2 %v1421_v27  ;;  %1621 = vmatpush.msra.mxu3 %v1453_v28  ;;  %v1664_v27 = vld [vmem:[#allocation17 + $0xe0] sm:$0xff]  ;;  %v1643_v28 = vld [vmem:[#allocation17 + $0x38] sm:$0xff] }
 0x34e   :  { %1562 = vmatpush.msra.mxu0 %v1355_v17  ;;  %1582 = vmatpush.msra.mxu1 %v1387_v18 }
 0x34f   :  { %1602 = vmatpush.msrb.mxu2 %v1419_v31  ;;  %1622 = vmatpush.msra.mxu3 %v1451_v32  ;;  %v1662_v31 = vld [vmem:[#allocation17 + $0xd0] sm:$0xff]  ;;  %v1641_v32 = vld [vmem:[#allocation17 + $0x28] sm:$0xff] }
 0x350   :  { %1563 = vmatpush.msra.mxu0 %v1353_v21  ;;  %1583 = vmatpush.msra.mxu1 %v1385_v22  ;;  %v1648_v21 = vld [vmem:[#allocation17 + $0x60] sm:$0xff]  ;;  %v1647_v22 = vld [vmem:[#allocation17 + $0x58] sm:$0xff] }
 0x351   :  { %1603 = vmatpush.msrb.mxu2 %v1417_v35  ;;  %1623 = vmatpush.msra.mxu3 %v1449_v36  ;;  %v1660_v35 = vld [vmem:[#allocation17 + $0xc0] sm:$0xff]  ;;  %v1639_v36 = vld [vmem:[#allocation17 + $0x18] sm:$0xff] }
 0x352   :  { %1564 = vmatpush.msra.mxu0 %v1351_v25  ;;  %1584 = vmatpush.msra.mxu1 %v1383_v26  ;;  %v1665_v25 = vld [vmem:[#allocation17 + $0xe8] sm:$0xff]  ;;  %v1644_v26 = vld [vmem:[#allocation17 + $0x40] sm:$0xff] }
 0x353   :  { %1604 = vmatpush.msrb.mxu2 %v1415_v39  ;;  %1624 = vmatpush.msra.mxu3 %v1447_v41  ;;  %v1219_v58 = vpop.f32.mrf.mxu2  ;;  %v1658_v39 = vld [vmem:[#allocation17 + $0xb0] sm:$0xff]  ;;  %v1657_v41 = vld [vmem:[#allocation17 + $0xa8] sm:$0xff] }
 0x354   :  { %1565 = vmatpush.msra.mxu0 %v1349_v29  ;;  %1585 = vmatpush.msra.mxu1 %v1381_v30  ;;  %v1663_v29 = vld [vmem:[#allocation17 + $0xd8] sm:$0xff]  ;;  %v1642_v30 = vld [vmem:[#allocation17 + $0x30] sm:$0xff] }
 0x355   :  { %1605 = vmatpush.msrb.mxu2 %v1413_v44  ;;  %1625 = vmatpush.msra.mxu3 %v1445_v45  ;;  %v1655_v44 = vld [vmem:[#allocation17 + $0x98] sm:$0xff]  ;;  %v1654_v45 = vld [vmem:[#allocation17 + $0x90] sm:$0xff] }
 0x356   :  { %1566 = vmatpush.msra.mxu0 %v1347_v33  ;;  %1586 = vmatpush.msra.mxu1 %v1379_v34  ;;  %v1661_v33 = vld [vmem:[#allocation17 + $0xc8] sm:$0xff]  ;;  %v1640_v34 = vld [vmem:[#allocation17 + $0x20] sm:$0xff] }
 0x357   :  { %1606 = vmatpush.msrb.mxu2 %v1411_v48  ;;  %1626 = vmatpush.msra.mxu3 %v1443_v50  ;;  %v1468_v48 = vld [vmem:[#allocation16] sm:$0x3] }
 0x358   :  { %1567 = vmatpush.msra.mxu0 %v1345_v37  ;;  %1587 = vmatpush.msra.mxu1 %v1377_v38  ;;  %v1659_v37 = vld [vmem:[#allocation17 + $0xb8] sm:$0xff]  ;;  %v1638_v38 = vld [vmem:[#allocation17 + $0x10] sm:$0xff]  ;;  %v1470_v50 = vperm.slane %v1468_v48, 0 }
 0x359   :  { %1607 = vmatpush.msrb.mxu2 %v1409_v49  ;;  %1627 = vmatpush.msra.mxu3 %v1441_v51 }
 0x35a   :  { %1568 = vmatpush.msra.mxu0 %v1343_v42  ;;  %1588 = vmatpush.msra.mxu1 %v1375_v43  ;;  %v1636_v42 = vld [vmem:[#allocation17] sm:$0xff] }
 0x35b   :  { %1608 = vmatpush.msrb.mxu2 %v1407_v52  ;;  %1628 = vmatpush.msra.mxu3 %v1439_v53  ;;  %v1656_v43 = vld [vmem:[#allocation17 + $0xa0] sm:$0xff] }
 0x35c   :  { %1569 = vmatpush.msra.mxu0 %v1341_v46  ;;  %1589 = vmatpush.msra.mxu1 %v1373_v47  ;;  %v1653_v46 = vld [vmem:[#allocation17 + $0x88] sm:$0xff]  ;;  %v1652_v47 = vld [vmem:[#allocation17 + $0x80] sm:$0xff] }
 0x35d   :  { %1609 = vmatpush.msrb.mxu2 %v1405_v54  ;;  %1629 = vmatpush.msra.mxu3 %v1437_v55  ;;  %v1471_v54 = vperm.slane %v1468_v48, 1 }
 0x3b9   :  { %v1259_v62 = vpop.f32.mrf.mxu0  ;;  %v1279_v63 = vpop.f32.mrf.mxu1 }
 0x3ba   :  { %v1260_v0 = vadd.f32 %v1259_v62, %v1179_v40  ;;  %v1280_v1 = vadd.f32 %v1279_v63, %v1199_v56  ;;  %v1637_v40 = vld [vmem:[#allocation17 + $0x8] sm:$0xff] }
 0x3bc   :  { %v1332_v2 = vadd.f32 %v1324_v60, %v1260_v0  ;;  %v1333_v3 = vadd.f32 %v1325_v61, %v1280_v1 }
 0x3be   :  { %v1336_v4 = vmax.f32 %v1332_v2, 0.0  ;;  %v1337_v5 = vmax.f32 %v1333_v3, 0.0 }
 0x3c0   :  { %v1299_v10 = vpop.f32.mrf.mxu2  ;;  %1490 = vmatmul.f32.vlgmr.msrb.gmra.mxu0 %v1336_v4  ;;  %1510 = vmatmul.f32.vlgmr.msrb.gmra.mxu1 %v1337_v5  ;;  %v1319_v11 = vpop.f32.mrf.mxu3 }
 0x3c1   :  { %v1300_v14 = vadd.f32 %v1299_v10, %v1219_v58  ;;  %v1320_v15 = vadd.f32 %v1319_v11, %v1239_v59  ;;  %1672 = vmatpush.msrb.mxu0 %v1651_v6  ;;  %1692 = vmatpush.msrb.mxu1 %v1667_v7 }
 0x3c3   :  { %v1334_v17 = vadd.f32 %v1326_v8, %v1300_v14  ;;  %v1335_v18 = vadd.f32 %v1327_v9, %v1320_v15  ;;  %1673 = vmatpush.msrb.mxu0 %v1650_v12  ;;  %1693 = vmatpush.msrb.mxu1 %v1666_v13 }
 0x3c5   :  { %v1338_v19 = vmax.f32 %v1334_v17, 0.0  ;;  %v1339_v20 = vmax.f32 %v1335_v18, 0.0  ;;  %1674 = vmatpush.msrb.mxu0 %v1649_v16  ;;  %1694 = vmatpush.msrb.mxu1 %v1665_v25 }
 0x3c7   :  { %1530 = vmatmul.f32.vlgmr.msra.gmra.mxu2 %v1338_v19  ;;  %1550 = vmatmul.f32.vlgmr.msrb.gmra.mxu3 %v1339_v20 }
 0x3c8   :  { %1570 = vmatmul.f32.vlgmr.msra.gmra.mxu0 %v1336_v4  ;;  %1590 = vmatmul.f32.vlgmr.msra.gmra.mxu1 %v1337_v5  ;;  %v1782_v5 = vld [vmem:[#allocation19] ss:$0 sm:$0xff] }
 0x3c9   :  { %1675 = vmatpush.msrb.mxu0 %v1648_v21  ;;  %1695 = vmatpush.msrb.mxu1 %v1664_v27 }
 0x3cb   :  { %1676 = vmatpush.msrb.mxu0 %v1647_v22  ;;  %1696 = vmatpush.msrb.mxu1 %v1663_v29 }
 0x3cd   :  { %1677 = vmatpush.msrb.mxu0 %v1646_v23  ;;  %1697 = vmatpush.msrb.mxu1 %v1662_v31 }
 0x3cf   :  { %1610 = vmatmul.f32.vlgmr.msrb.gmra.mxu2 %v1338_v19  ;;  %1630 = vmatmul.f32.vlgmr.msra.gmra.mxu3 %v1339_v20 }
 0x3d0   :  { %1678 = vmatpush.msrb.mxu0 %v1645_v24  ;;  %1698 = vmatpush.msrb.mxu1 %v1661_v33 }
 0x3d2   :  { %1679 = vmatpush.msrb.mxu0 %v1644_v26  ;;  %1699 = vmatpush.msrb.mxu1 %v1660_v35 }
 0x3d4   :  { %1680 = vmatpush.msrb.mxu0 %v1643_v28  ;;  %1700 = vmatpush.msrb.mxu1 %v1659_v37 }
 0x3d6   :  { %1681 = vmatpush.msrb.mxu0 %v1642_v30  ;;  %1701 = vmatpush.msrb.mxu1 %v1658_v39 }
 0x3d8   :  { %1682 = vmatpush.msrb.mxu0 %v1641_v32  ;;  %1702 = vmatpush.msrb.mxu1 %v1657_v41 }
 0x3da   :  { %1683 = vmatpush.msrb.mxu0 %v1640_v34  ;;  %1703 = vmatpush.msrb.mxu1 %v1656_v43 }
 0x3dc   :  { %1684 = vmatpush.msrb.mxu0 %v1639_v36  ;;  %1704 = vmatpush.msrb.mxu1 %v1655_v44 }
 0x3de   :  { %1685 = vmatpush.msrb.mxu0 %v1638_v38  ;;  %1705 = vmatpush.msrb.mxu1 %v1654_v45 }
 0x3e0   :  { %1686 = vmatpush.msrb.mxu0 %v1637_v40  ;;  %1706 = vmatpush.msrb.mxu1 %v1653_v46 }
 0x3e2   :  { %1687 = vmatpush.msrb.mxu0 %v1636_v42  ;;  %1707 = vmatpush.msrb.mxu1 %v1652_v47 }
 0x43d   :  { %v1491_v49 = vpop.f32.mrf.mxu0  ;;  %v1511_v52 = vpop.f32.mrf.mxu1 }
 0x43e   :  { %v1492_v51 = vadd.f32 %v1491_v49, %v1470_v50 }
 0x440   :  { %v1512_v53 = vadd.f32 %v1511_v52, %v1492_v51 }
 0x445   :  { %v1571_v55 = vpop.f32.mrf.mxu0  ;;  %v1591_v62 = vpop.f32.mrf.mxu1 }
 0x446   :  { %v1572_v59 = vadd.f32 %v1571_v55, %v1471_v54 }
 0x448   :  { %v1592_v63 = vadd.f32 %v1591_v62, %v1572_v59 }
 0x44a   :  { %v1531_v56 = vpop.f32.mrf.mxu2  ;;  %v1551_v57 = vpop.f32.mrf.mxu3 }
 0x44b   :  { %v1532_v58 = vadd.f32 %v1531_v56, %v1512_v53 }
 0x44d   :  { %v1552_v60 = vadd.f32 %v1551_v57, %v1532_v58 }
 0x44f   :  { %v1634_v61 = vmax.f32 %v1552_v60, 0.0 }
 0x451   :  { %1688 = vmatmul.f32.vlgmr.msrb.gmra.mxu0 %v1634_v61 }
 0x452   :  { %v1611_v0 = vpop.f32.mrf.mxu2  ;;  %v1631_v2 = vpop.f32.mrf.mxu3 }
 0x453   :  { %v1612_v1 = vadd.f32 %v1611_v0, %v1592_v63 }
 0x455   :  { %v1632_v3 = vadd.f32 %v1631_v2, %v1612_v1 }
 0x457   :  { %v1635_v4 = vmax.f32 %v1632_v3, 0.0 }
 0x459   :  { %1708 = vmatmul.f32.vlgmr.msrb.gmra.mxu1 %v1635_v4 }
 0x4ce   :  { %v1689_v6 = vpop.f32.mrf.mxu0 }
 0x4cf   :  { %v1690_v7 = vadd.f32 %v1782_v5, %v1689_v6 }
 0x4d6   :  { %v1709_v8 = vpop.f32.mrf.mxu1 }
 0x4d7   :  { %v1710_v9 = vadd.f32 %v1709_v8, %v1690_v7 }
 0x4d9   :  { %1783 = vtanh.f32 %v1710_v9 }
 0x4df   :  { %v1784_v10 = vpop.eup %1783 }
 0x4e0   :  { %v1713_v11 = vmul.f32 2.0, %v1784_v10 }
 0x4e2   :  { %1714 = vst [vmem:[#allocation20] sm:$0x3] %v1713_v11 }
 0x4e3   :  { %1725 = dma.vmem_to_hbm [thread:$0]  %s1721_s11, 32, %s1723_s1, [#allocation4]  }
 0x4e4   :  { %2085 = dma.done.wait [#allocation4], 32  }
 0x4e5   :  { %2086 = vsyncadd [#allocation4], 4294967264 }
 0x4e6   :  { %1730 = vsyncpa [#allocation3], 1 }
 0x4e7   :  { %1731 = vsyncpa [#allocation6], 1 }
 0x4e8   :  { %1732 = vsyncpa [#allocation9], 1 }
 0x4e9   :  { %1733 = vsyncpa [#allocation12], 1 }
 0x4ea   :  { %1734 = vsyncpa [#allocation15], 1 }
 0x4eb   :  { %1735 = vsyncpa [#allocation18], 1 }
 0x4ec   :  { %1736 = vsyncpa [#allocation4], 1 }

</bundles_post_ra>
